<compile_context>
chip_gen: v7x
topology: tpu7x:2x2x1
jax: 0.10.0
libtpu: 0.0.40
codegen_flags: <defaults>
</compile_context>

<pallas_src>
import jax
import jax.numpy as jnp
import numpy as np
from jax.experimental import pallas as pl
from jax.experimental.pallas import tpu as pltpu


# ----------------------------------------------------------------------------
# Fused per-document forward kernel.
# ----------------------------------------------------------------------------
def make_forward(doclen, sen_dim, statedim, elnum, elnum_pad, cau_classes, cau_pad):
    doclen_pad = ((doclen + 7) // 8) * 8
    NEG = -1e30  # plain Python float (jnp constants must not be captured)

    def kernel(sen_ref, prein_ref,
               w1s_ref, w1h_ref, b1e_ref, w2e_ref, b2e_ref,
               wt2b_ref, bt2b_ref, w1hc_ref, w2c_ref, b2c_ref,
               wb2t_ref, bb2t_ref,
               emo_prob_ref, cau_prob_ref,
               state_scr, outs_scr):
        x = pl.program_id(0)

        @pl.when(x == 0)
        def _():
            state_scr[...] = jnp.zeros_like(state_scr)
            outs_scr[...] = jnp.zeros_like(outs_scr)

        # -------------------- EmoModel step --------------------
        sen = sen_ref[0].astype(jnp.bfloat16)                # (1, sen_dim)
        st = state_scr[...].astype(jnp.bfloat16)             # (1, statedim)
        # concat([sen, state]) @ W1  ==  sen @ W1s + state @ W1h
        pre = (jnp.dot(sen, w1s_ref[...], preferred_element_type=jnp.float32)
               + jnp.dot(st, w1h_ref[...], preferred_element_type=jnp.float32)
               + b1e_ref[...])
        outp = jnp.tanh(pre)                                  # (1, statedim) f32
        # TODO(synk): F.dropout is identity at inference (test mode).
        logits = (jnp.dot(outp.astype(jnp.bfloat16), w2e_ref[...],
                          preferred_element_type=jnp.float32) + b2e_ref[...])
        col = jax.lax.broadcasted_iota(jnp.int32, logits.shape, 1)
        valid = col < elnum
        masked = jnp.where(valid, logits, NEG)
        m = jnp.max(masked, axis=-1, keepdims=True)
        e = jnp.where(valid, jnp.exp(masked - m), 0.0)
        s = jnp.sum(e, axis=-1, keepdims=True)
        emo_prob_ref[0] = e * pl.reciprocal(s, approx=True)

        # Branch decision: argmax(prob) > 0  <=>  max(logits[1:elnum]) > logits[0]
        rest = jnp.where(jnp.logical_and(valid, col >= 1), logits, NEG)
        l0 = jnp.where(col == 0, logits, NEG)
        sel = (jnp.max(rest, axis=-1, keepdims=True)
               > jnp.max(l0, axis=-1, keepdims=True)).astype(jnp.float32)  # (1,1)

        # -------------------- Cause chain --------------------
        # botstate = top2bot(state); pair/pos/bias projections already hoisted
        # into prein (host-side XLA), so only bot @ W1h stays in the recurrence.
        bot = (jnp.dot(outp.astype(jnp.bfloat16), wt2b_ref[...],
                       preferred_element_type=jnp.float32) + bt2b_ref[...])
        prein = prein_ref[0]                                  # (doclen_pad, statedim)
        for y in range(doclen):                               # trace-time unroll
            bot = jnp.tanh(prein[y:y + 1, :]
                           + jnp.dot(bot.astype(jnp.bfloat16), w1hc_ref[...],
                                     preferred_element_type=jnp.float32))
            # TODO(synk): dropout is identity at inference.
            outs_scr[y:y + 1, :] = bot

        # Batched classifier + softmax epilogue (one dense (doclen_pad,128) slab).
        clog = (jnp.dot(outs_scr[...].astype(jnp.bfloat16), w2c_ref[...],
                        preferred_element_type=jnp.float32) + b2c_ref[...])
        ccol = jax.lax.broadcasted_iota(jnp.int32, clog.shape, 1)
        cvalid = ccol < cau_classes
        cmask = jnp.where(cvalid, clog, NEG)
        cm = jnp.max(cmask, axis=-1, keepdims=True)
        ce = jnp.where(cvalid, jnp.exp(cmask - cm), 0.0)
        cs = jnp.sum(ce, axis=-1, keepdims=True)
        cau_prob_ref[0] = ce * pl.reciprocal(cs, approx=True)

        # state = bot2top(botstate) if action > 0 else emo outp
        new_top = (jnp.dot(bot.astype(jnp.bfloat16), wb2t_ref[...],
                           preferred_element_type=jnp.float32) + bb2t_ref[...])
        state_scr[...] = sel * new_top + (1.0 - sel) * outp

    def wspec(shape):
        return pl.BlockSpec(shape, lambda x: (0, 0))

    @jax.jit
    def forward_doc(clsemb, pos_table,
                    w1s, w1h, b1e, w2e, b2e,
                    wt2b, bt2b, w1pair, w1hc, w1pos, b1c, w2c, b2c, wb2t, bb2t):
        # ---- XLA prologue: hoisted, batched recurrence-independent projections ----
        cls_bf = clsemb.astype(jnp.bfloat16)
        cls_a = jnp.dot(cls_bf, w1pair[:sen_dim], preferred_element_type=jnp.float32)
        cls_b = jnp.dot(cls_bf, w1pair[sen_dim:], preferred_element_type=jnp.float32)
        pos_proj = jnp.dot(pos_table.astype(jnp.bfloat16), w1pos,
                           preferred_element_type=jnp.float32)
        idx = jnp.arange(doclen)
        dist = jnp.abs(idx[None, :] - idx[:, None])           # dist[x, y] = |y - x|
        pre_in = (cls_a[:, None, :] + cls_b[None, :, :]
                  + pos_proj[dist] + b1c[None, :, :])          # (D, D, statedim)
        pre_in = jnp.pad(pre_in, ((0, 0), (0, doclen_pad - doclen), (0, 0)))
        sen3 = clsemb.reshape(doclen, 1, sen_dim)

        emo_prob3, cau_prob3 = pl.pallas_call(
            kernel,
            grid=(doclen,),
            in_specs=[
                pl.BlockSpec((1, 1, sen_dim), lambda x: (x, 0, 0)),
                pl.BlockSpec((1, doclen_pad, statedim), lambda x: (x, 0, 0)),
                wspec((sen_dim, statedim)),        # Emo W1 (sen part), bf16
                wspec((statedim, statedim)),       # Emo W1 (state part), bf16
                wspec((1, statedim)),              # Emo b1
                wspec((statedim, elnum_pad)),      # Emo W2, bf16
                wspec((1, elnum_pad)),             # Emo b2
                wspec((statedim, statedim)),       # top2bot W, bf16
                wspec((1, statedim)),              # top2bot b
                wspec((statedim, statedim)),       # Cau W1 (state part), bf16
                wspec((statedim, cau_pad)),        # Cau W2, bf16
                wspec((1, cau_pad)),               # Cau b2
                wspec((statedim, statedim)),       # bot2top W, bf16
                wspec((1, statedim)),              # bot2top b
            ],
            out_specs=(
                pl.BlockSpec((1, 1, elnum_pad), lambda x: (x, 0, 0)),
                pl.BlockSpec((1, doclen_pad, cau_pad), lambda x: (x, 0, 0)),
            ),
            out_shape=(
                jax.ShapeDtypeStruct((doclen, 1, elnum_pad), jnp.float32),
                jax.ShapeDtypeStruct((doclen, doclen_pad, cau_pad), jnp.float32),
            ),
            scratch_shapes=[
                pltpu.VMEM((1, statedim), jnp.float32),           # carried top state
                pltpu.VMEM((doclen_pad, statedim), jnp.float32),  # cause bot states
            ],
            compiler_params=pltpu.CompilerParams(
                dimension_semantics=("arbitrary",),   # recurrence over doc positions
                vmem_limit_bytes=4 * 1024 * 1024),
        )(sen3, pre_in, w1s, w1h, b1e, w2e, b2e,
          wt2b, bt2b, w1hc, w2c, b2c, wb2t, bb2t)
        return (emo_prob3[:, 0, :elnum],
                cau_prob3[:, :doclen, :cau_classes])

    return forward_doc


# ----------------------------------------------------------------------------
# Pure-JAX step-by-step reference (same dtype policy: bf16 weights, f32 accum).
# ----------------------------------------------------------------------------
def bdot(a, w):
    return jnp.dot(a.astype(jnp.bfloat16), w, preferred_element_type=jnp.float32)


def reference_forward(clsemb, pos_table,
                      w1s, w1h, b1e, w2e, b2e,
                      wt2b, bt2b, w1pair, w1hc, w1pos, b1c, w2c, b2c, wb2t, bb2t,
                      doclen, elnum, cau_classes, statedim):
    state = jnp.zeros((1, statedim), jnp.float32)
    emo_probs, cau_probs, emo_tags, cau_tags = [], [], [], []
    for x in range(doclen):
        outp = jnp.tanh(bdot(clsemb[x:x + 1], w1s) + bdot(state, w1h) + b1e)
        prob = jax.nn.softmax(bdot(outp, w2e)[:, :elnum] + b2e[:, :elnum], axis=1)
        emo_probs.append(prob)
        action = int(jnp.argmax(prob, axis=1)[0])
        emo_tags.append(action)
        bot = bdot(outp, wt2b) + bt2b
        rows = []
        for y in range(doclen):
            d = abs(y - x)
            pair = jnp.concatenate([clsemb[x:x + 1], clsemb[y:y + 1]], axis=1)
            bot = jnp.tanh(bdot(pair, w1pair) + bdot(bot, w1hc)
                           + bdot(pos_table[d:d + 1], w1pos) + b1c)
            rows.append(jax.nn.softmax(bdot(bot, w2c)[:, :cau_classes]
                                       + b2c[:, :cau_classes], axis=1))
        cau_probs.append(jnp.concatenate(rows, axis=0))
        if action > 0:
            cau_tags.append([int(t) for t in jnp.argmax(cau_probs[-1], axis=1)])
            state = bdot(bot, wb2t) + bb2t
        else:
            state = outp
    return (jnp.concatenate(emo_probs, axis=0), jnp.stack(cau_probs, axis=0),
            emo_tags, cau_tags)


# ----------------------------------------------------------------------------
if __name__ == "__main__":
    key = jax.random.PRNGKey(0)

    DOCLEN = 6
    HIDDENDIM = 64
    SEN_DIM = 2 * HIDDENDIM          # cls embedding width (bi-LSTM output)
    PAIR_DIM = 4 * HIDDENDIM         # pair embedding width
    STATEDIM = 128
    ELNUM = 7
    EMO_PAD = 128
    CAU_CLASSES = 2
    CAU_PAD = 128
    POS_RAW = 50
    MAX_DOC_LEN = 16

    def rnd(k, shape, scale=0.1):
        return (scale * jax.random.normal(k, shape)).astype(jnp.float32)

    ks = jax.random.split(key, 20)
    bf = jnp.bfloat16

    # TODO(synk): tokenizer + BERT/ALBERT + LSTM/Transformer cls/pair encoders are
    # external pretrained modules; replaced by deterministic synthetic embeddings.
    clsemb = rnd(ks[0], (DOCLEN, SEN_DIM), 1.0)
    pos_table = rnd(ks[16], (MAX_DOC_LEN, POS_RAW), 1.0)   # nn.Embedding weight

    # EmoModel params (stored (in, out) = transpose of nn.Linear.weight; bf16 mats).
    w1_sen = rnd(ks[1], (SEN_DIM, STATEDIM)).astype(bf)
    w1_sta = rnd(ks[2], (STATEDIM, STATEDIM)).astype(bf)
    b1_emo = rnd(ks[3], (1, STATEDIM))
    w2_emo = jnp.zeros((STATEDIM, EMO_PAD), jnp.float32).at[:, :ELNUM].set(
        rnd(ks[4], (STATEDIM, ELNUM), 1.0)).astype(bf)
    b2_emo = jnp.zeros((1, EMO_PAD), jnp.float32).at[:, :ELNUM].set(
        rnd(ks[5], (1, ELNUM), 1.0))

    # top2bot / bot2top params.
    w_t2b = rnd(ks[6], (STATEDIM, STATEDIM)).astype(bf)
    b_t2b = rnd(ks[7], (1, STATEDIM))
    w_b2t = rnd(ks[8], (STATEDIM, STATEDIM)).astype(bf)
    b_b2t = rnd(ks[9], (1, STATEDIM))

    # CauModel params.
    w1_pair = rnd(ks[10], (PAIR_DIM, STATEDIM)).astype(bf)
    w1_bsta = rnd(ks[11], (STATEDIM, STATEDIM)).astype(bf)
    w1_pos = rnd(ks[12], (POS_RAW, STATEDIM)).astype(bf)
    b1_cau = rnd(ks[13], (1, STATEDIM))
    w2_cau = jnp.zeros((STATEDIM, CAU_PAD), jnp.float32).at[:, :CAU_CLASSES].set(
        rnd(ks[14], (STATEDIM, CAU_CLASSES), 1.0)).astype(bf)
    b2_cau = jnp.zeros((1, CAU_PAD), jnp.float32).at[:, :CAU_CLASSES].set(
        rnd(ks[15], (1, CAU_CLASSES), 1.0))

    forward_doc = make_forward(DOCLEN, SEN_DIM, STATEDIM, ELNUM, EMO_PAD,
                               CAU_CLASSES, CAU_PAD)

    emo_probs_k, cau_probs_k = forward_doc(
        clsemb, pos_table,
        w1_sen, w1_sta, b1_emo, w2_emo, b2_emo,
        w_t2b, b_t2b, w1_pair, w1_bsta, w1_pos, b1_cau, w2_cau, b2_cau,
        w_b2t, b_b2t)
    jax.block_until_ready((emo_probs_k, cau_probs_k))

    # Single host pull; reconstruct Model.forward outputs (test mode = argmax).
    emo_np = np.asarray(emo_probs_k)          # (DOCLEN, ELNUM)
    cau_np = np.asarray(cau_probs_k)          # (DOCLEN, DOCLEN, CAU_CLASSES)
    emo_tags = [int(t) for t in emo_np.argmax(axis=1)]
    emo_actprobs = [float(emo_np[x, t]) for x, t in enumerate(emo_tags)]
    cau_tags, cau_actprobs = [], []
    for x, t in enumerate(emo_tags):
        if t > 0:
            acts = [int(a) for a in cau_np[x].argmax(axis=1)]
            cau_tags.append(acts)
            cau_actprobs.append([float(cau_np[x, y, a]) for y, a in enumerate(acts)])

    # ---- correctness vs the step-by-step reference ----
    emo_probs_r, cau_probs_r, emo_tags_r, cau_tags_r = reference_forward(
        clsemb, pos_table,
        w1_sen, w1_sta, b1_emo, w2_emo, b2_emo,
        w_t2b, b_t2b, w1_pair, w1_bsta, w1_pos, b1_cau, w2_cau, b2_cau,
        w_b2t, b_b2t, DOCLEN, ELNUM, CAU_CLASSES, STATEDIM)

    assert float(jnp.max(jnp.abs(emo_probs_k - emo_probs_r))) < 1e-2
    assert float(jnp.max(jnp.abs(cau_probs_k - cau_probs_r))) < 1e-2
    assert emo_tags == emo_tags_r
    assert cau_tags == cau_tags_r

    print("KERNEL_OK")
</pallas_src>

<mosaic_0001>
module attributes {stable_mosaic.version = 11 : i64} {
  func.func @kernel(%arg0: i32, %arg1: memref<1x1x128xf32, #tpu.memory_space<vmem>>, %arg2: memref<1x8x128xf32, #tpu.memory_space<vmem>>, %arg3: memref<128x128xbf16, #tpu.memory_space<vmem>>, %arg4: memref<128x128xbf16, #tpu.memory_space<vmem>>, %arg5: memref<1x128xf32, #tpu.memory_space<vmem>>, %arg6: memref<128x128xbf16, #tpu.memory_space<vmem>>, %arg7: memref<1x128xf32, #tpu.memory_space<vmem>>, %arg8: memref<128x128xbf16, #tpu.memory_space<vmem>>, %arg9: memref<1x128xf32, #tpu.memory_space<vmem>>, %arg10: memref<128x128xbf16, #tpu.memory_space<vmem>>, %arg11: memref<128x128xbf16, #tpu.memory_space<vmem>>, %arg12: memref<1x128xf32, #tpu.memory_space<vmem>>, %arg13: memref<128x128xbf16, #tpu.memory_space<vmem>>, %arg14: memref<1x128xf32, #tpu.memory_space<vmem>>, %arg15: memref<1x1x128xf32, #tpu.memory_space<vmem>>, %arg16: memref<1x8x128xf32, #tpu.memory_space<vmem>>, %arg17: memref<1x128xf32, #tpu.memory_space<vmem>>, %arg18: memref<8x128xf32, #tpu.memory_space<vmem>>) attributes {dimension_semantics = [#tpu.dimension_semantics<arbitrary>], iteration_bounds = array<i64: 6>, scalar_prefetch = 0 : i64, scratch_operands = 2 : i64, tpu.core_type = #tpu.core_type<tc>, window_params = [{transform_indices = @transform_0, window_bounds = array<i64: 1, 1, 128>}, {transform_indices = @transform_1, window_bounds = array<i64: 1, 8, 128>}, {pipeline_mode = #tpu.pipeline_mode<synchronous>, transform_indices = @transform_2, window_bounds = array<i64: 128, 128>}, {pipeline_mode = #tpu.pipeline_mode<synchronous>, transform_indices = @transform_3, window_bounds = array<i64: 128, 128>}, {pipeline_mode = #tpu.pipeline_mode<synchronous>, transform_indices = @transform_4, window_bounds = array<i64: 1, 128>}, {pipeline_mode = #tpu.pipeline_mode<synchronous>, transform_indices = @transform_5, window_bounds = array<i64: 128, 128>}, {pipeline_mode = #tpu.pipeline_mode<synchronous>, transform_indices = @transform_6, window_bounds = array<i64: 1, 128>}, {pipeline_mode = #tpu.pipeline_mode<synchronous>, transform_indices = @transform_7, window_bounds = array<i64: 128, 128>}, {pipeline_mode = #tpu.pipeline_mode<synchronous>, transform_indices = @transform_8, window_bounds = array<i64: 1, 128>}, {pipeline_mode = #tpu.pipeline_mode<synchronous>, transform_indices = @transform_9, window_bounds = array<i64: 128, 128>}, {pipeline_mode = #tpu.pipeline_mode<synchronous>, transform_indices = @transform_10, window_bounds = array<i64: 128, 128>}, {pipeline_mode = #tpu.pipeline_mode<synchronous>, transform_indices = @transform_11, window_bounds = array<i64: 1, 128>}, {pipeline_mode = #tpu.pipeline_mode<synchronous>, transform_indices = @transform_12, window_bounds = array<i64: 128, 128>}, {pipeline_mode = #tpu.pipeline_mode<synchronous>, transform_indices = @transform_13, window_bounds = array<i64: 1, 128>}, {transform_indices = @transform_14, window_bounds = array<i64: 1, 1, 128>}, {transform_indices = @transform_15, window_bounds = array<i64: 1, 8, 128>}]} {
    %c0_i32 = arith.constant 0 : i32
    %0 = arith.cmpi eq, %arg0, %c0_i32 : i32
    %1 = arith.extui %0 : i1 to i32
    %c0_i32_0 = arith.constant 0 : i32
    %2 = arith.cmpi ne, %1, %c0_i32_0 : i32
    scf.if %2 {
      %cst_84 = arith.constant 0.000000e+00 : f32
      %146 = vector.broadcast %cst_84 : f32 to vector<1x128xf32>
      %c0_85 = arith.constant 0 : index
      %c0_86 = arith.constant 0 : index
      %147 = vector.load %arg17[%c0_85, %c0_86] : memref<1x128xf32, #tpu.memory_space<vmem>>, vector<1x128xf32>
      tpu.vector_store %arg17[%c0_85, %c0_86], %146 {strides = array<i32>} : memref<1x128xf32, #tpu.memory_space<vmem>>, vector<1x128xf32>,
      %cst_87 = arith.constant 0.000000e+00 : f32
      %148 = vector.broadcast %cst_87 : f32 to vector<8x128xf32>
      %c0_88 = arith.constant 0 : index
      %c0_89 = arith.constant 0 : index
      %149 = vector.load %arg18[%c0_88, %c0_89] : memref<8x128xf32, #tpu.memory_space<vmem>>, vector<8x128xf32>
      tpu.vector_store %arg18[%c0_88, %c0_89], %148 {strides = array<i32>} : memref<8x128xf32, #tpu.memory_space<vmem>>, vector<8x128xf32>,
    } else {
    }
    %c0 = arith.constant 0 : index
    %c0_1 = arith.constant 0 : index
    %c0_2 = arith.constant 0 : index
    %3 = vector.load %arg1[%c0, %c0_1, %c0_2] : memref<1x1x128xf32, #tpu.memory_space<vmem>>, vector<1x1x128xf32>
    %4 = vector.shape_cast %3 : vector<1x1x128xf32> to vector<1x128xf32>
    %5 = arith.truncf %4 : vector<1x128xf32> to vector<1x128xbf16>
    %c0_3 = arith.constant 0 : index
    %c0_4 = arith.constant 0 : index
    %6 = vector.load %arg17[%c0_3, %c0_4] : memref<1x128xf32, #tpu.memory_space<vmem>>, vector<1x128xf32>
    %7 = arith.truncf %6 : vector<1x128xf32> to vector<1x128xbf16>
    %c0_5 = arith.constant 0 : index
    %c0_6 = arith.constant 0 : index
    %8 = vector.load %arg3[%c0_5, %c0_6] : memref<128x128xbf16, #tpu.memory_space<vmem>>, vector<128x128xbf16>
    %cst = arith.constant dense<0.000000e+00> : vector<1x128xf32>
    %9 = tpu.matmul %5, %8, %cst {dimension_numbers = #tpu.dot_dimension_numbers<[1], [0], [0], [1], [0, 0, 1, 1], [], []>} : vector<1x128xbf16>, vector<128x128xbf16>, vector<1x128xf32> -> vector<1x128xf32>
    %c0_7 = arith.constant 0 : index
    %c0_8 = arith.constant 0 : index
    %10 = vector.load %arg4[%c0_7, %c0_8] : memref<128x128xbf16, #tpu.memory_space<vmem>>, vector<128x128xbf16>
    %cst_9 = arith.constant dense<0.000000e+00> : vector<1x128xf32>
    %11 = tpu.matmul %7, %10, %cst_9 {dimension_numbers = #tpu.dot_dimension_numbers<[1], [0], [0], [1], [0, 0, 1, 1], [], []>} : vector<1x128xbf16>, vector<128x128xbf16>, vector<1x128xf32> -> vector<1x128xf32>
    %12 = arith.addf %9, %11 : vector<1x128xf32>
    %c0_10 = arith.constant 0 : index
    %c0_11 = arith.constant 0 : index
    %13 = vector.load %arg5[%c0_10, %c0_11] : memref<1x128xf32, #tpu.memory_space<vmem>>, vector<1x128xf32>
    %14 = arith.addf %12, %13 : vector<1x128xf32>
    %15 = math.tanh %14 : vector<1x128xf32>
    %16 = arith.truncf %15 : vector<1x128xf32> to vector<1x128xbf16>
    %c0_12 = arith.constant 0 : index
    %c0_13 = arith.constant 0 : index
    %17 = vector.load %arg6[%c0_12, %c0_13] : memref<128x128xbf16, #tpu.memory_space<vmem>>, vector<128x128xbf16>
    %cst_14 = arith.constant dense<0.000000e+00> : vector<1x128xf32>
    %18 = tpu.matmul %16, %17, %cst_14 {dimension_numbers = #tpu.dot_dimension_numbers<[1], [0], [0], [1], [0, 0, 1, 1], [], []>} : vector<1x128xbf16>, vector<128x128xbf16>, vector<1x128xf32> -> vector<1x128xf32>
    %c0_15 = arith.constant 0 : index
    %c0_16 = arith.constant 0 : index
    %19 = vector.load %arg7[%c0_15, %c0_16] : memref<1x128xf32, #tpu.memory_space<vmem>>, vector<1x128xf32>
    %20 = arith.addf %18, %19 : vector<1x128xf32>
    %21 = tpu.iota {dimensions = array<i32: 1>} : vector<1x128xi32>
    %c7_i32 = arith.constant 7 : i32
    %22 = vector.broadcast %c7_i32 : i32 to vector<1x128xi32>
    %23 = arith.cmpi slt, %21, %22 : vector<1x128xi32>
    %cst_17 = arith.constant -1.000000e+30 : f32
    %24 = vector.broadcast %cst_17 : f32 to vector<1x128xf32>
    %25 = arith.select %23, %20, %24 : vector<1x128xi1>, vector<1x128xf32>
    %cst_18 = arith.constant dense<0xFF800000> : vector<1xf32>
    %26 = vector.multi_reduction <maximumf>, %25, %cst_18 [1] : vector<1x128xf32> to vector<1xf32>
    %27 = vector.shape_cast %26 : vector<1xf32> to vector<1x1xf32>
    %28 = vector.broadcast %27 : vector<1x1xf32> to vector<1x128xf32>
    %29 = arith.subf %25, %28 : vector<1x128xf32>
    %30 = math.exp %29 : vector<1x128xf32>
    %cst_19 = arith.constant 0.000000e+00 : f32
    %31 = vector.broadcast %cst_19 : f32 to vector<1x128xf32>
    %32 = arith.select %23, %30, %31 : vector<1x128xi1>, vector<1x128xf32>
    %cst_20 = arith.constant dense<0.000000e+00> : vector<1xf32>
    %33 = vector.multi_reduction <add>, %32, %cst_20 [1] : vector<1x128xf32> to vector<1xf32>
    %34 = vector.shape_cast %33 : vector<1xf32> to vector<1x1xf32>
    %35 = tpu.reciprocal %34 {approx = true} : vector<1x1xf32> -> vector<1x1xf32>
    %36 = vector.broadcast %35 : vector<1x1xf32> to vector<1x128xf32>
    %37 = arith.mulf %32, %36 : vector<1x128xf32>
    %c0_21 = arith.constant 0 : index
    %c0_22 = arith.constant 0 : index
    %c0_23 = arith.constant 0 : index
    %38 = vector.load %arg15[%c0_21, %c0_22, %c0_23] : memref<1x1x128xf32, #tpu.memory_space<vmem>>, vector<1x1x128xf32>
    %39 = vector.shape_cast %38 : vector<1x1x128xf32> to vector<1x128xf32>
    %40 = vector.shape_cast %37 : vector<1x128xf32> to vector<1x1x128xf32>
    tpu.vector_store %arg15[%c0_21, %c0_22, %c0_23], %40 {strides = array<i32>} : memref<1x1x128xf32, #tpu.memory_space<vmem>>, vector<1x1x128xf32>,
    %c1_i32 = arith.constant 1 : i32
    %41 = vector.broadcast %c1_i32 : i32 to vector<1x128xi32>
    %42 = arith.cmpi sge, %21, %41 : vector<1x128xi32>
    %43 = arith.andi %23, %42 : vector<1x128xi1>
    %cst_24 = arith.constant -1.000000e+30 : f32
    %44 = vector.broadcast %cst_24 : f32 to vector<1x128xf32>
    %45 = arith.select %43, %20, %44 : vector<1x128xi1>, vector<1x128xf32>
    %c0_i32_25 = arith.constant 0 : i32
    %46 = vector.broadcast %c0_i32_25 : i32 to vector<1x128xi32>
    %47 = arith.cmpi eq, %21, %46 : vector<1x128xi32>
    %cst_26 = arith.constant -1.000000e+30 : f32
    %48 = vector.broadcast %cst_26 : f32 to vector<1x128xf32>
    %49 = arith.select %47, %20, %48 : vector<1x128xi1>, vector<1x128xf32>
    %cst_27 = arith.constant dense<0xFF800000> : vector<1xf32>
    %50 = vector.multi_reduction <maximumf>, %45, %cst_27 [1] : vector<1x128xf32> to vector<1xf32>
    %51 = vector.shape_cast %50 : vector<1xf32> to vector<1x1xf32>
    %cst_28 = arith.constant dense<0xFF800000> : vector<1xf32>
    %52 = vector.multi_reduction <maximumf>, %49, %cst_28 [1] : vector<1x128xf32> to vector<1xf32>
    %53 = vector.shape_cast %52 : vector<1xf32> to vector<1x1xf32>
    %54 = arith.cmpf ogt, %51, %53 : vector<1x1xf32>
    %55 = arith.extui %54 : vector<1x1xi1> to vector<1x1xi32>
    %56 = arith.sitofp %55 : vector<1x1xi32> to vector<1x1xf32>
    %57 = arith.truncf %15 : vector<1x128xf32> to vector<1x128xbf16>
    %c0_29 = arith.constant 0 : index
    %c0_30 = arith.constant 0 : index
    %58 = vector.load %arg8[%c0_29, %c0_30] : memref<128x128xbf16, #tpu.memory_space<vmem>>, vector<128x128xbf16>
    %cst_31 = arith.constant dense<0.000000e+00> : vector<1x128xf32>
    %59 = tpu.matmul %57, %58, %cst_31 {dimension_numbers = #tpu.dot_dimension_numbers<[1], [0], [0], [1], [0, 0, 1, 1], [], []>} : vector<1x128xbf16>, vector<128x128xbf16>, vector<1x128xf32> -> vector<1x128xf32>
    %c0_32 = arith.constant 0 : index
    %c0_33 = arith.constant 0 : index
    %60 = vector.load %arg9[%c0_32, %c0_33] : memref<1x128xf32, #tpu.memory_space<vmem>>, vector<1x128xf32>
    %61 = arith.addf %59, %60 : vector<1x128xf32>
    %c0_34 = arith.constant 0 : index
    %c0_35 = arith.constant 0 : index
    %c0_36 = arith.constant 0 : index
    %62 = vector.load %arg2[%c0_34, %c0_35, %c0_36] : memref<1x8x128xf32, #tpu.memory_space<vmem>>, vector<1x8x128xf32>
    %63 = vector.shape_cast %62 : vector<1x8x128xf32> to vector<8x128xf32>
    %64 = vector.extract_strided_slice %63 {offsets = [0, 0], sizes = [1, 128], strides = [1, 1]} : vector<8x128xf32> to vector<1x128xf32>
    %65 = arith.truncf %61 : vector<1x128xf32> to vector<1x128xbf16>
    %c0_37 = arith.constant 0 : index
    %c0_38 = arith.constant 0 : index
    %66 = vector.load %arg10[%c0_37, %c0_38] : memref<128x128xbf16, #tpu.memory_space<vmem>>, vector<128x128xbf16>
    %cst_39 = arith.constant dense<0.000000e+00> : vector<1x128xf32>
    %67 = tpu.matmul %65, %66, %cst_39 {dimension_numbers = #tpu.dot_dimension_numbers<[1], [0], [0], [1], [0, 0, 1, 1], [], []>} : vector<1x128xbf16>, vector<128x128xbf16>, vector<1x128xf32> -> vector<1x128xf32>
    %68 = arith.addf %64, %67 : vector<1x128xf32>
    %69 = math.tanh %68 : vector<1x128xf32>
    %c0_40 = arith.constant 0 : index
    %c0_41 = arith.constant 0 : index
    %70 = vector.load %arg18[%c0_40, %c0_41] : memref<8x128xf32, #tpu.memory_space<vmem>>, vector<1x128xf32>
    tpu.vector_store %arg18[%c0_40, %c0_41], %69 {strides = array<i32>} : memref<8x128xf32, #tpu.memory_space<vmem>>, vector<1x128xf32>,
    %71 = vector.extract_strided_slice %63 {offsets = [1, 0], sizes = [1, 128], strides = [1, 1]} : vector<8x128xf32> to vector<1x128xf32>
    %72 = arith.truncf %69 : vector<1x128xf32> to vector<1x128xbf16>
    %c0_42 = arith.constant 0 : index
    %c0_43 = arith.constant 0 : index
    %73 = vector.load %arg10[%c0_42, %c0_43] : memref<128x128xbf16, #tpu.memory_space<vmem>>, vector<128x128xbf16>
    %cst_44 = arith.constant dense<0.000000e+00> : vector<1x128xf32>
    %74 = tpu.matmul %72, %73, %cst_44 {dimension_numbers = #tpu.dot_dimension_numbers<[1], [0], [0], [1], [0, 0, 1, 1], [], []>} : vector<1x128xbf16>, vector<128x128xbf16>, vector<1x128xf32> -> vector<1x128xf32>
    %75 = arith.addf %71, %74 : vector<1x128xf32>
    %76 = math.tanh %75 : vector<1x128xf32>
    %c1 = arith.constant 1 : index
    %c0_45 = arith.constant 0 : index
    %77 = vector.load %arg18[%c1, %c0_45] : memref<8x128xf32, #tpu.memory_space<vmem>>, vector<1x128xf32>
    tpu.vector_store %arg18[%c1, %c0_45], %76 {strides = array<i32>} : memref<8x128xf32, #tpu.memory_space<vmem>>, vector<1x128xf32>,
    %78 = vector.extract_strided_slice %63 {offsets = [2, 0], sizes = [1, 128], strides = [1, 1]} : vector<8x128xf32> to vector<1x128xf32>
    %79 = arith.truncf %76 : vector<1x128xf32> to vector<1x128xbf16>
    %c0_46 = arith.constant 0 : index
    %c0_47 = arith.constant 0 : index
    %80 = vector.load %arg10[%c0_46, %c0_47] : memref<128x128xbf16, #tpu.memory_space<vmem>>, vector<128x128xbf16>
    %cst_48 = arith.constant dense<0.000000e+00> : vector<1x128xf32>
    %81 = tpu.matmul %79, %80, %cst_48 {dimension_numbers = #tpu.dot_dimension_numbers<[1], [0], [0], [1], [0, 0, 1, 1], [], []>} : vector<1x128xbf16>, vector<128x128xbf16>, vector<1x128xf32> -> vector<1x128xf32>
    %82 = arith.addf %78, %81 : vector<1x128xf32>
    %83 = math.tanh %82 : vector<1x128xf32>
    %c2 = arith.constant 2 : index
    %c0_49 = arith.constant 0 : index
    %84 = vector.load %arg18[%c2, %c0_49] : memref<8x128xf32, #tpu.memory_space<vmem>>, vector<1x128xf32>
    tpu.vector_store %arg18[%c2, %c0_49], %83 {strides = array<i32>} : memref<8x128xf32, #tpu.memory_space<vmem>>, vector<1x128xf32>,
    %85 = vector.extract_strided_slice %63 {offsets = [3, 0], sizes = [1, 128], strides = [1, 1]} : vector<8x128xf32> to vector<1x128xf32>
    %86 = arith.truncf %83 : vector<1x128xf32> to vector<1x128xbf16>
    %c0_50 = arith.constant 0 : index
    %c0_51 = arith.constant 0 : index
    %87 = vector.load %arg10[%c0_50, %c0_51] : memref<128x128xbf16, #tpu.memory_space<vmem>>, vector<128x128xbf16>
    %cst_52 = arith.constant dense<0.000000e+00> : vector<1x128xf32>
    %88 = tpu.matmul %86, %87, %cst_52 {dimension_numbers = #tpu.dot_dimension_numbers<[1], [0], [0], [1], [0, 0, 1, 1], [], []>} : vector<1x128xbf16>, vector<128x128xbf16>, vector<1x128xf32> -> vector<1x128xf32>
    %89 = arith.addf %85, %88 : vector<1x128xf32>
    %90 = math.tanh %89 : vector<1x128xf32>
    %c3 = arith.constant 3 : index
    %c0_53 = arith.constant 0 : index
    %91 = vector.load %arg18[%c3, %c0_53] : memref<8x128xf32, #tpu.memory_space<vmem>>, vector<1x128xf32>
    tpu.vector_store %arg18[%c3, %c0_53], %90 {strides = array<i32>} : memref<8x128xf32, #tpu.memory_space<vmem>>, vector<1x128xf32>,
    %92 = vector.extract_strided_slice %63 {offsets = [4, 0], sizes = [1, 128], strides = [1, 1]} : vector<8x128xf32> to vector<1x128xf32>
    %93 = arith.truncf %90 : vector<1x128xf32> to vector<1x128xbf16>
    %c0_54 = arith.constant 0 : index
    %c0_55 = arith.constant 0 : index
    %94 = vector.load %arg10[%c0_54, %c0_55] : memref<128x128xbf16, #tpu.memory_space<vmem>>, vector<128x128xbf16>
    %cst_56 = arith.constant dense<0.000000e+00> : vector<1x128xf32>
    %95 = tpu.matmul %93, %94, %cst_56 {dimension_numbers = #tpu.dot_dimension_numbers<[1], [0], [0], [1], [0, 0, 1, 1], [], []>} : vector<1x128xbf16>, vector<128x128xbf16>, vector<1x128xf32> -> vector<1x128xf32>
    %96 = arith.addf %92, %95 : vector<1x128xf32>
    %97 = math.tanh %96 : vector<1x128xf32>
    %c4 = arith.constant 4 : index
    %c0_57 = arith.constant 0 : index
    %98 = vector.load %arg18[%c4, %c0_57] : memref<8x128xf32, #tpu.memory_space<vmem>>, vector<1x128xf32>
    tpu.vector_store %arg18[%c4, %c0_57], %97 {strides = array<i32>} : memref<8x128xf32, #tpu.memory_space<vmem>>, vector<1x128xf32>,
    %99 = vector.extract_strided_slice %63 {offsets = [5, 0], sizes = [1, 128], strides = [1, 1]} : vector<8x128xf32> to vector<1x128xf32>
    %100 = arith.truncf %97 : vector<1x128xf32> to vector<1x128xbf16>
    %c0_58 = arith.constant 0 : index
    %c0_59 = arith.constant 0 : index
    %101 = vector.load %arg10[%c0_58, %c0_59] : memref<128x128xbf16, #tpu.memory_space<vmem>>, vector<128x128xbf16>
    %cst_60 = arith.constant dense<0.000000e+00> : vector<1x128xf32>
    %102 = tpu.matmul %100, %101, %cst_60 {dimension_numbers = #tpu.dot_dimension_numbers<[1], [0], [0], [1], [0, 0, 1, 1], [], []>} : vector<1x128xbf16>, vector<128x128xbf16>, vector<1x128xf32> -> vector<1x128xf32>
    %103 = arith.addf %99, %102 : vector<1x128xf32>
    %104 = math.tanh %103 : vector<1x128xf32>
    %c5 = arith.constant 5 : index
    %c0_61 = arith.constant 0 : index
    %105 = vector.load %arg18[%c5, %c0_61] : memref<8x128xf32, #tpu.memory_space<vmem>>, vector<1x128xf32>
    tpu.vector_store %arg18[%c5, %c0_61], %104 {strides = array<i32>} : memref<8x128xf32, #tpu.memory_space<vmem>>, vector<1x128xf32>,
    %c0_62 = arith.constant 0 : index
    %c0_63 = arith.constant 0 : index
    %106 = vector.load %arg18[%c0_62, %c0_63] : memref<8x128xf32, #tpu.memory_space<vmem>>, vector<8x128xf32>
    %107 = arith.truncf %106 : vector<8x128xf32> to vector<8x128xbf16>
    %c0_64 = arith.constant 0 : index
    %c0_65 = arith.constant 0 : index
    %108 = vector.load %arg11[%c0_64, %c0_65] : memref<128x128xbf16, #tpu.memory_space<vmem>>, vector<128x128xbf16>
    %cst_66 = arith.constant dense<0.000000e+00> : vector<8x128xf32>
    %109 = tpu.matmul %107, %108, %cst_66 {dimension_numbers = #tpu.dot_dimension_numbers<[1], [0], [0], [1], [0, 0, 1, 1], [], []>} : vector<8x128xbf16>, vector<128x128xbf16>, vector<8x128xf32> -> vector<8x128xf32>
    %c0_67 = arith.constant 0 : index
    %c0_68 = arith.constant 0 : index
    %110 = vector.load %arg12[%c0_67, %c0_68] : memref<1x128xf32, #tpu.memory_space<vmem>>, vector<1x128xf32>
    %111 = vector.broadcast %110 : vector<1x128xf32> to vector<8x128xf32>
    %112 = arith.addf %109, %111 : vector<8x128xf32>
    %113 = tpu.iota {dimensions = array<i32: 1>} : vector<8x128xi32>
    %c2_i32 = arith.constant 2 : i32
    %114 = vector.broadcast %c2_i32 : i32 to vector<8x128xi32>
    %115 = arith.cmpi slt, %113, %114 : vector<8x128xi32>
    %cst_69 = arith.constant -1.000000e+30 : f32
    %116 = vector.broadcast %cst_69 : f32 to vector<8x128xf32>
    %117 = arith.select %115, %112, %116 : vector<8x128xi1>, vector<8x128xf32>
    %cst_70 = arith.constant dense<0xFF800000> : vector<8xf32>
    %118 = vector.multi_reduction <maximumf>, %117, %cst_70 [1] : vector<8x128xf32> to vector<8xf32>
    %119 = vector.shape_cast %118 : vector<8xf32> to vector<8x1xf32>
    %120 = vector.broadcast %119 : vector<8x1xf32> to vector<8x128xf32>
    %121 = arith.subf %117, %120 : vector<8x128xf32>
    %122 = math.exp %121 : vector<8x128xf32>
    %cst_71 = arith.constant 0.000000e+00 : f32
    %123 = vector.broadcast %cst_71 : f32 to vector<8x128xf32>
    %124 = arith.select %115, %122, %123 : vector<8x128xi1>, vector<8x128xf32>
    %cst_72 = arith.constant dense<0.000000e+00> : vector<8xf32>
    %125 = vector.multi_reduction <add>, %124, %cst_72 [1] : vector<8x128xf32> to vector<8xf32>
    %126 = vector.shape_cast %125 : vector<8xf32> to vector<8x1xf32>
    %127 = tpu.reciprocal %126 {approx = true} : vector<8x1xf32> -> vector<8x1xf32>
    %128 = vector.broadcast %127 : vector<8x1xf32> to vector<8x128xf32>
    %129 = arith.mulf %124, %128 : vector<8x128xf32>
    %c0_73 = arith.constant 0 : index
    %c0_74 = arith.constant 0 : index
    %c0_75 = arith.constant 0 : index
    %130 = vector.load %arg16[%c0_73, %c0_74, %c0_75] : memref<1x8x128xf32, #tpu.memory_space<vmem>>, vector<1x8x128xf32>
    %131 = vector.shape_cast %130 : vector<1x8x128xf32> to vector<8x128xf32>
    %132 = vector.shape_cast %129 : vector<8x128xf32> to vector<1x8x128xf32>
    tpu.vector_store %arg16[%c0_73, %c0_74, %c0_75], %132 {strides = array<i32>} : memref<1x8x128xf32, #tpu.memory_space<vmem>>, vector<1x8x128xf32>,
    %133 = arith.truncf %104 : vector<1x128xf32> to vector<1x128xbf16>
    %c0_76 = arith.constant 0 : index
    %c0_77 = arith.constant 0 : index
    %134 = vector.load %arg13[%c0_76, %c0_77] : memref<128x128xbf16, #tpu.memory_space<vmem>>, vector<128x128xbf16>
    %cst_78 = arith.constant dense<0.000000e+00> : vector<1x128xf32>
    %135 = tpu.matmul %133, %134, %cst_78 {dimension_numbers = #tpu.dot_dimension_numbers<[1], [0], [0], [1], [0, 0, 1, 1], [], []>} : vector<1x128xbf16>, vector<128x128xbf16>, vector<1x128xf32> -> vector<1x128xf32>
    %c0_79 = arith.constant 0 : index
    %c0_80 = arith.constant 0 : index
    %136 = vector.load %arg14[%c0_79, %c0_80] : memref<1x128xf32, #tpu.memory_space<vmem>>, vector<1x128xf32>
    %137 = arith.addf %135, %136 : vector<1x128xf32>
    %138 = vector.broadcast %56 : vector<1x1xf32> to vector<1x128xf32>
    %139 = arith.mulf %138, %137 : vector<1x128xf32>
    %cst_81 = arith.constant 1.000000e+00 : f32
    %140 = vector.broadcast %cst_81 : f32 to vector<1x1xf32>
    %141 = arith.subf %140, %56 : vector<1x1xf32>
    %142 = vector.broadcast %141 : vector<1x1xf32> to vector<1x128xf32>
    %143 = arith.mulf %142, %15 : vector<1x128xf32>
    %144 = arith.addf %139, %143 : vector<1x128xf32>
    %c0_82 = arith.constant 0 : index
    %c0_83 = arith.constant 0 : index
    %145 = vector.load %arg17[%c0_82, %c0_83] : memref<1x128xf32, #tpu.memory_space<vmem>>, vector<1x128xf32>
    tpu.vector_store %arg17[%c0_82, %c0_83], %144 {strides = array<i32>} : memref<1x128xf32, #tpu.memory_space<vmem>>, vector<1x128xf32>,
    return
  }
  func.func @transform_0(%arg0: i32) -> (i32, i32, i32) {
    %c0_i32 = arith.constant 0 : i32
    %c0_i32_0 = arith.constant 0 : i32
    %c0_i32_1 = arith.constant 0 : i32
    return %arg0, %c0_i32, %c0_i32_0 : i32, i32, i32
  }
  func.func @transform_1(%arg0: i32) -> (i32, i32, i32) {
    %c0_i32 = arith.constant 0 : i32
    %c0_i32_0 = arith.constant 0 : i32
    %c0_i32_1 = arith.constant 0 : i32
    return %arg0, %c0_i32, %c0_i32_0 : i32, i32, i32
  }
  func.func @transform_2(%arg0: i32) -> (i32, i32) {
    %c0_i32 = arith.constant 0 : i32
    %c0_i32_0 = arith.constant 0 : i32
    %c0_i32_1 = arith.constant 0 : i32
    return %c0_i32, %c0_i32_0 : i32, i32
  }
  func.func @transform_3(%arg0: i32) -> (i32, i32) {
    %c0_i32 = arith.constant 0 : i32
    %c0_i32_0 = arith.constant 0 : i32
    %c0_i32_1 = arith.constant 0 : i32
    return %c0_i32, %c0_i32_0 : i32, i32
  }
  func.func @transform_4(%arg0: i32) -> (i32, i32) {
    %c0_i32 = arith.constant 0 : i32
    %c0_i32_0 = arith.constant 0 : i32
    %c0_i32_1 = arith.constant 0 : i32
    return %c0_i32, %c0_i32_0 : i32, i32
  }
  func.func @transform_5(%arg0: i32) -> (i32, i32) {
    %c0_i32 = arith.constant 0 : i32
    %c0_i32_0 = arith.constant 0 : i32
    %c0_i32_1 = arith.constant 0 : i32
    return %c0_i32, %c0_i32_0 : i32, i32
  }
  func.func @transform_6(%arg0: i32) -> (i32, i32) {
    %c0_i32 = arith.constant 0 : i32
    %c0_i32_0 = arith.constant 0 : i32
    %c0_i32_1 = arith.constant 0 : i32
    return %c0_i32, %c0_i32_0 : i32, i32
  }
  func.func @transform_7(%arg0: i32) -> (i32, i32) {
    %c0_i32 = arith.constant 0 : i32
    %c0_i32_0 = arith.constant 0 : i32
    %c0_i32_1 = arith.constant 0 : i32
    return %c0_i32, %c0_i32_0 : i32, i32
  }
  func.func @transform_8(%arg0: i32) -> (i32, i32) {
    %c0_i32 = arith.constant 0 : i32
    %c0_i32_0 = arith.constant 0 : i32
    %c0_i32_1 = arith.constant 0 : i32
    return %c0_i32, %c0_i32_0 : i32, i32
  }
  func.func @transform_9(%arg0: i32) -> (i32, i32) {
    %c0_i32 = arith.constant 0 : i32
    %c0_i32_0 = arith.constant 0 : i32
    %c0_i32_1 = arith.constant 0 : i32
    return %c0_i32, %c0_i32_0 : i32, i32
  }
  func.func @transform_10(%arg0: i32) -> (i32, i32) {
    %c0_i32 = arith.constant 0 : i32
    %c0_i32_0 = arith.constant 0 : i32
    %c0_i32_1 = arith.constant 0 : i32
    return %c0_i32, %c0_i32_0 : i32, i32
  }
  func.func @transform_11(%arg0: i32) -> (i32, i32) {
    %c0_i32 = arith.constant 0 : i32
    %c0_i32_0 = arith.constant 0 : i32
    %c0_i32_1 = arith.constant 0 : i32
    return %c0_i32, %c0_i32_0 : i32, i32
  }
  func.func @transform_12(%arg0: i32) -> (i32, i32) {
    %c0_i32 = arith.constant 0 : i32
    %c0_i32_0 = arith.constant 0 : i32
    %c0_i32_1 = arith.constant 0 : i32
    return %c0_i32, %c0_i32_0 : i32, i32
  }
  func.func @transform_13(%arg0: i32) -> (i32, i32) {
    %c0_i32 = arith.constant 0 : i32
    %c0_i32_0 = arith.constant 0 : i32
    %c0_i32_1 = arith.constant 0 : i32
    return %c0_i32, %c0_i32_0 : i32, i32
  }
  func.func @transform_14(%arg0: i32) -> (i32, i32, i32) {
    %c0_i32 = arith.constant 0 : i32
    %c0_i32_0 = arith.constant 0 : i32
    %c0_i32_1 = arith.constant 0 : i32
    return %arg0, %c0_i32, %c0_i32_0 : i32, i32, i32
  }
  func.func @transform_15(%arg0: i32) -> (i32, i32, i32) {
    %c0_i32 = arith.constant 0 : i32
    %c0_i32_0 = arith.constant 0 : i32
    %c0_i32_1 = arith.constant 0 : i32
    return %arg0, %c0_i32, %c0_i32_0 : i32, i32, i32
  }
}

</mosaic_0001>

<bundles_post_ra>
// kernel: forward_doc.1
= control target key start
LH: loop header
LB: loop body
LE: loop exit
PB: predicated region body
PF: predicated region fallthrough
CT: control target
= control target key end

     0   :  { %s2662_s18 = smov 0   ;;  %s3168_s0 = inlined_call_operand.vmem [shape: f32[6,1,128], index: 0, kind: input, shape index: {}]   ;;  %s3169_s1 = inlined_call_operand.vmem [shape: f32[6,8,128], index: 1, kind: input, shape index: {}]   ;;  %s3170_s2 = inlined_call_operand.vmem [shape: bf16[128,128], index: 2, kind: input, shape index: {}]   ;;  %s3171_s3 = inlined_call_operand.vmem [shape: bf16[128,128], index: 3, kind: input, shape index: {}]   ;;  %s3172_s4 = inlined_call_operand.vmem [shape: f32[1,128], index: 4, kind: input, shape index: {}]   ;;  %s3173_s5 = inlined_call_operand.vmem [shape: bf16[128,128], index: 5, kind: input, shape index: {}]   ;;  %s3174_s6 = inlined_call_operand.vmem [shape: f32[1,128], index: 6, kind: input, shape index: {}]   ;;  %s3175_s7 = inlined_call_operand.vmem [shape: bf16[128,128], index: 7, kind: input, shape index: {}]   ;;  %s3176_s8 = inlined_call_operand.vmem [shape: f32[1,128], index: 8, kind: input, shape index: {}]   ;;  %s3177_s9 = inlined_call_operand.vmem [shape: bf16[128,128], index: 9, kind: input, shape index: {}]   ;;  %s3178_s10 = inlined_call_operand.vmem [shape: bf16[128,128], index: 10, kind: input, shape index: {}]   ;;  %s3179_s11 = inlined_call_operand.vmem [shape: f32[1,128], index: 11, kind: input, shape index: {}]   ;;  %s3180_s12 = inlined_call_operand.vmem [shape: bf16[128,128], index: 12, kind: input, shape index: {}]   ;;  %s3181_s13 = inlined_call_operand.vmem [shape: f32[1,128], index: 13, kind: input, shape index: {}]   ;;  %s3182_s14 = inlined_call_operand.vmem [shape: f32[6,1,128], index: 14, kind: output, shape index: {0}]   ;;  %s3183_s15 = inlined_call_operand.vmem [shape: f32[6,8,128], index: 15, kind: output, shape index: {1}]  }
   0x1 LB: > { %3185 = sst [smem:[#allocation4_spill]] %s2577_s18  ;;  %s1986_s19 = sadd.s32 4294967295, %s2577_s18   ;;  %s2577_s18 = sphi %s2662_s18, %s26_s18  }
   0x2   : > { %p1990_p0 = scmp.ge.s32.totalorder %s2577_s18, 1  ;;  %p447_p1 = scmp.lt.s32.totalorder %s2577_s18, 7 }
   0x4   : > { %p448_p2 = pnand %p1990_p0, %p447_p1 }
   0x5   : > { %p499_p3 = scmp.lt.s32.totalorder (!%p448_p2), %s1986_s19, 5  ;;  %p1993_p4 = scmp.ne.s32.totalorder (!%p448_p2), %s1986_s19, 0 }
   0x6   : > { %451 = sbr.rel (%p448_p2) target bundleno = 2419 (0x973), region = 76 }
   0xd   : > { %s2670_s20 = scalar_select %p499_p3, %s1986_s19, 5 }
   0xe   : > { %517 = sbr.rel (%p1993_p4) target bundleno = 21 (0x15), region = 80  ;;  %v2579_v0 = vmov (!%p1993_p4), 0.0  }
   0xf   : > { %s501_s23 = scalar_lea.vmem %s3168_s0, %s2670_s20  ;;  %s1991_s24 = sshll.u32 %s2670_s20, 3  ;;  %518 = vst [vmem:[#allocation2] sm:$0x1] (!%p1993_p4), %v2579_v0  ;;  %519 = vst [vmem:[#allocation3] sm:$0xff] (!%p1993_p4), %v2579_v0 }
  0x10   : > { %s2680_s27 = scalar_lea.vmem %s3169_s1, %s1991_s24  ;;  %s508_s30 = scalar_lea.vmem %s3182_s14, %s2670_s20 }
  0x11   : > { %s2689_s18 = scalar_lea.vmem %s3183_s15, %s1991_s24 }
  0x15 PF: > { %v2453_v1 = vld [vmem:[%s3171_s3] sm:$0xff]   ;;  %v2580_v2 = vmov 0.0   ;;  %v2455_v4 = vld [vmem:[%s3171_s3 + $0x8] sm:$0xff]   ;;  %vm2581_vm0 = vmmov 0   ;;  %v2457_v6 = vld [vmem:[%s3171_s3 + $0x10] sm:$0xff]   ;;  %v841_v59 = vlaneseq  ;;  %vm845_vm2 = vcmask 1040384  }
  0x16   : > { %2202 = vmatprep.subr.bf16.mxu0 %v2580_v2  ;;  %2222 = vmatprep.subr.bf16.mxu1 %v2580_v2  ;;  %v2454_v3 = vld [vmem:[%s3170_s2] sm:$0xff]   ;;  %v2456_v5 = vld [vmem:[%s3170_s2 + $0x8] sm:$0xff]   ;;  %v2458_v7 = vld [vmem:[%s3170_s2 + $0x10] sm:$0xff]  }
  0x17   : > { %2203 = vmatpush3.bf16.msra.mxu0 %v2453_v1  ;;  %2218 = vmatprep.mubr.msk.bf16.mxu0 %vm2581_vm0, %v2580_v2  ;;  %v2459_v8 = vld [vmem:[%s3171_s3 + $0x18] sm:$0xff]   ;;  %v2461_v10 = vld [vmem:[%s3171_s3 + $0x20] sm:$0xff]   ;;  %v2463_v12 = vld [vmem:[%s3171_s3 + $0x28] sm:$0xff]   ;;  %v2877_v60 = vand.u32 127, %v841_v59 }
  0x18   : > { %2223 = vmatpush3.bf16.msra.mxu1 %v2454_v3  ;;  %2204 = vmatprep.subr.bf16.mxu0 %v2580_v2  ;;  %v2460_v9 = vld [vmem:[%s3170_s2 + $0x18] sm:$0xff]   ;;  %v2462_v11 = vld [vmem:[%s3170_s2 + $0x20] sm:$0xff]   ;;  %v2464_v13 = vld [vmem:[%s3170_s2 + $0x28] sm:$0xff]  }
  0x19   : > { %2224 = vmatprep.subr.bf16.mxu1 %v2580_v2  ;;  %2238 = vmatprep.mubr.msk.bf16.mxu1 %vm2581_vm0, %v2580_v2  ;;  %v2465_v14 = vld [vmem:[%s3171_s3 + $0x30] sm:$0xff]   ;;  %v2467_v16 = vld [vmem:[%s3171_s3 + $0x38] sm:$0xff]   ;;  %v522_v17 = vld [vmem:[#allocation2] sm:$0x1]  ;;  %vm843_vm1 = vcmp.lt.s32.totalorder %v2877_v60, 7  ;;  %vm859_vm3 = vcmp.ge.s32.totalorder %v2877_v60, 1 }
  0x1a   : > { %v2466_v15 = vld [vmem:[%s3170_s2 + $0x30] sm:$0xff]   ;;  %v2468_v18 = vld [vmem:[%s3170_s2 + $0x38] sm:$0xff]   ;;  %v520_v19 = vld [vmem:[%s501_s23] sm:$0x1]  ;;  %v523_v21 = vpack.c.bf16 %v522_v17, %v522_v17  ;;  %vm1770_vm4 = vcmp.lt.s32.totalorder %v2877_v60, 2  ;;  %vm862_vm6 = vcmp.eq.s32.totalorder %v2877_v60, 0 }
  0x1b   : > { %2205 = vmatpush3.bf16.msra.mxu0 %v2455_v4  ;;  %v2469_v20 = vld [vmem:[%s3173_s5] sm:$0xff]   ;;  %v521_v23 = vpack.c.bf16 %v520_v19, %v520_v19  ;;  %v2471_v24 = vld [vmem:[%s3173_s5 + $0x8] sm:$0xff]   ;;  %v2473_v26 = vld [vmem:[%s3173_s5 + $0x10] sm:$0xff]  }
  0x1c   : > { %2225 = vmatpush3.bf16.msra.mxu1 %v2456_v5  ;;  %2206 = vmatprep.subr.bf16.mxu0 %v2580_v2  ;;  %v2470_v22 = vld [vmem:[%s3175_s7] sm:$0xff]   ;;  %v2472_v25 = vld [vmem:[%s3175_s7 + $0x8] sm:$0xff]   ;;  %v2474_v27 = vld [vmem:[%s3175_s7 + $0x10] sm:$0xff]  }
  0x1d   : > { %2226 = vmatprep.subr.bf16.mxu1 %v2580_v2  ;;  %v2475_v28 = vld [vmem:[%s3173_s5 + $0x18] sm:$0xff]   ;;  %v2477_v30 = vld [vmem:[%s3173_s5 + $0x20] sm:$0xff]   ;;  %v2479_v32 = vld [vmem:[%s3173_s5 + $0x28] sm:$0xff]  }
  0x1e   : > { %v2476_v29 = vld [vmem:[%s3175_s7 + $0x18] sm:$0xff]   ;;  %v2478_v31 = vld [vmem:[%s3175_s7 + $0x20] sm:$0xff]   ;;  %v2480_v33 = vld [vmem:[%s3175_s7 + $0x28] sm:$0xff]  }
  0x1f   : > { %2207 = vmatpush3.bf16.msra.mxu0 %v2457_v6  ;;  %v2481_v34 = vld [vmem:[%s3173_s5 + $0x30] sm:$0xff]   ;;  %v2483_v36 = vld [vmem:[%s3173_s5 + $0x38] sm:$0xff]   ;;  %v732_v40 = vld [vmem:[%s3172_s4] sm:$0x1] }
  0x20   : > { %2227 = vmatpush3.bf16.msra.mxu1 %v2458_v7  ;;  %2208 = vmatprep.subr.bf16.mxu0 %v2580_v2  ;;  %v2482_v35 = vld [vmem:[%s3175_s7 + $0x30] sm:$0xff]   ;;  %v2484_v37 = vld [vmem:[%s3175_s7 + $0x38] sm:$0xff]   ;;  %v2485_v50 = vld [vmem:[%s3177_s9] sm:$0xff]  }
  0x21   : > { %2228 = vmatprep.subr.bf16.mxu1 %v2580_v2  ;;  %v2486_v52 = vld [vmem:[%s3177_s9 + $0x8] sm:$0xff]   ;;  %v2487_v53 = vld [vmem:[%s3177_s9 + $0x10] sm:$0xff]   ;;  %v2488_v54 = vld [vmem:[%s3177_s9 + $0x18] sm:$0xff]  }
  0x22   : > { %v2489_v55 = vld [vmem:[%s3177_s9 + $0x20] sm:$0xff]   ;;  %v2490_v56 = vld [vmem:[%s3177_s9 + $0x28] sm:$0xff]   ;;  %v2491_v57 = vld [vmem:[%s3177_s9 + $0x30] sm:$0xff]  }
  0x23   : > { %2209 = vmatpush3.bf16.msra.mxu0 %v2459_v8  ;;  %v2492_v58 = vld [vmem:[%s3177_s9 + $0x38] sm:$0xff]   ;;  %v752_v61 = vld [vmem:[%s3174_s6] sm:$0x1]  ;;  %v2499_v19 = vld [vmem:[%s3177_s9 + $0x30] sm:$0xff]  }
  0x24   : > { %2229 = vmatpush3.bf16.msra.mxu1 %v2460_v9  ;;  %2210 = vmatprep.subr.bf16.mxu0 %v2580_v2  ;;  %v889_v62 = vld [vmem:[%s3176_s8] sm:$0x1]  ;;  %v2512_v59 = vld [vmem:[%s3177_s9 + $0x18] sm:$0xff]   ;;  %vm860_vm5 = vmand %vm843_vm1, %vm859_vm3 }
  0x25   : > { %2230 = vmatprep.subr.bf16.mxu1 %v2580_v2  ;;  %v2497_v17 = vld [vmem:[%s3177_s9 + $0x20] sm:$0xff]  }
  0x27   : > { %2211 = vmatpush3.bf16.msra.mxu0 %v2461_v10 }
  0x28   : > { %2231 = vmatpush3.bf16.msra.mxu1 %v2462_v11  ;;  %2212 = vmatprep.subr.bf16.mxu0 %v2580_v2 }
  0x29   : > { %2232 = vmatprep.subr.bf16.mxu1 %v2580_v2 }
  0x2b   : > { %2213 = vmatpush3.bf16.msra.mxu0 %v2463_v12 }
  0x2c   : > { %2233 = vmatpush3.bf16.msra.mxu1 %v2464_v13  ;;  %2214 = vmatprep.subr.bf16.mxu0 %v2580_v2  ;;  %v2493_v13 = vld [vmem:[%s3177_s9] sm:$0xff]  }
  0x2d   : > { %2234 = vmatprep.subr.bf16.mxu1 %v2580_v2 }
  0x2f   : > { %2215 = vmatpush3.bf16.msra.mxu0 %v2465_v14  ;;  %v2494_v14 = vld [vmem:[%s3177_s9 + $0x8] sm:$0xff]  }
  0x30   : > { %2235 = vmatpush3.bf16.msra.mxu1 %v2466_v15  ;;  %2216 = vmatprep.subr.bf16.mxu0 %v2580_v2  ;;  %v2495_v15 = vld [vmem:[%s3177_s9 + $0x10] sm:$0xff]  }
  0x31   : > { %2236 = vmatprep.subr.bf16.mxu1 %v2580_v2 }
  0x33   : > { %2217 = vmatpush3.bf16.msra.mxu0 %v2467_v16  ;;  %v2496_v16 = vld [vmem:[%s3177_s9 + $0x18] sm:$0xff]  }
  0x34   : > { %2237 = vmatpush3.bf16.msra.mxu1 %v2468_v18  ;;  %2242 = vmatprep.subr.bf16.mxu0 %v2580_v2  ;;  %v2498_v18 = vld [vmem:[%s3177_s9 + $0x28] sm:$0xff]  }
  0x35   : > { %2262 = vmatprep.subr.bf16.mxu1 %v2580_v2 }
  0x36   : > { %2219 = vmatmul.mubr.bf16.vlgmr.msra.gmra.mrb[0].mxu0 %v523_v21 }
  0x37   : > { %2239 = vmatmul.mubr.bf16.vlgmr.msra.gmra.mrb[0].mxu1 %v521_v23  ;;  %2243 = vmatpush3.bf16.msra.mxu0 %v2469_v20  ;;  %v2500_v20 = vld [vmem:[%s3177_s9 + $0x38] sm:$0xff]  }
  0x38   : > { %2263 = vmatpush3.bf16.msra.mxu1 %v2470_v22  ;;  %2244 = vmatprep.subr.bf16.mxu0 %v2580_v2 }
  0x39   : > { %2264 = vmatprep.subr.bf16.mxu1 %v2580_v2  ;;  %2258 = vmatprep.mubr.msk.bf16.mxu0 %vm2581_vm0, %v2580_v2 }
  0x3a   : > { %2278 = vmatprep.mubr.msk.bf16.mxu1 %vm2581_vm0, %v2580_v2 }
  0x3b   : > { %2245 = vmatpush3.bf16.msra.mxu0 %v2471_v24 }
  0x3c   : > { %2265 = vmatpush3.bf16.msra.mxu1 %v2472_v25  ;;  %2246 = vmatprep.subr.bf16.mxu0 %v2580_v2 }
  0x3d   : > { %2266 = vmatprep.subr.bf16.mxu1 %v2580_v2 }
  0x3f   : > { %2247 = vmatpush3.bf16.msra.mxu0 %v2473_v26 }
  0x40   : > { %2267 = vmatpush3.bf16.msra.mxu1 %v2474_v27  ;;  %2248 = vmatprep.subr.bf16.mxu0 %v2580_v2  ;;  %v2501_v27 = vld [vmem:[%s3177_s9] sm:$0xff]  }
  0x41   : > { %2268 = vmatprep.subr.bf16.mxu1 %v2580_v2 }
  0x43   : > { %2249 = vmatpush3.bf16.msra.mxu0 %v2475_v28  ;;  %v2502_v28 = vld [vmem:[%s3177_s9 + $0x8] sm:$0xff]  }
  0x44   : > { %2269 = vmatpush3.bf16.msra.mxu1 %v2476_v29  ;;  %2250 = vmatprep.subr.bf16.mxu0 %v2580_v2  ;;  %v2503_v29 = vld [vmem:[%s3177_s9 + $0x10] sm:$0xff]  }
  0x45   : > { %2270 = vmatprep.subr.bf16.mxu1 %v2580_v2 }
  0x47   : > { %2251 = vmatpush3.bf16.msra.mxu0 %v2477_v30  ;;  %v2942_v30 = vld [vmem:[%s2680_s27] sm:$0xff] }
  0x48   : > { %2271 = vmatpush3.bf16.msra.mxu1 %v2478_v31  ;;  %2252 = vmatprep.subr.bf16.mxu0 %v2580_v2 }
  0x49   : > { %2272 = vmatprep.subr.bf16.mxu1 %v2580_v2 }
  0x4b   : > { %2253 = vmatpush3.bf16.msra.mxu0 %v2479_v32 }
  0x4c   : > { %2273 = vmatpush3.bf16.msra.mxu1 %v2480_v33  ;;  %2254 = vmatprep.subr.bf16.mxu0 %v2580_v2 }
  0x4d   : > { %2274 = vmatprep.subr.bf16.mxu1 %v2580_v2 }
  0x4f   : > { %2255 = vmatpush3.bf16.msra.mxu0 %v2481_v34 }
  0x50   : > { %2275 = vmatpush3.bf16.msra.mxu1 %v2482_v35  ;;  %2256 = vmatprep.subr.bf16.mxu0 %v2580_v2 }
  0x51   : > { %2276 = vmatprep.subr.bf16.mxu1 %v2580_v2 }
  0x53   : > { %2257 = vmatpush3.bf16.msra.mxu0 %v2483_v36 }
  0x54   : > { %2277 = vmatpush3.bf16.msra.mxu1 %v2484_v37  ;;  %2282 = vmatprep.subr.bf16.mxu0 %v2580_v2 }
  0x55   : > { %2302 = vmatprep.subr.bf16.mxu1 %v2580_v2 }
 0x109   : > { %v638_v38 = vpop.f32.mrb[0].mxu0 }
 0x10a   : > { %v726_v39 = vpop.f32.mrb[0].mxu1  ;;  %v2220_v41 = vpop.f32.mrb[1].mxu0 }
 0x10b   : > { %v727_v42 = vadd.f32 %v726_v39, %v638_v38  ;;  %v2240_v43 = vpop.f32.mrb[1].mxu1  ;;  %v641_v44 = vpop.f32.mrb[2].mxu0  ;;  %v2504_v39 = vld [vmem:[%s3177_s9 + $0x18] sm:$0xff]  }
 0x10c   : > { %v729_v45 = vpop.f32.mrb[2].mxu1  ;;  %v2221_v46 = vpop.f32.mrb[3].mxu0  ;;  %v2506_v43 = vld [vmem:[%s3177_s9 + $0x28] sm:$0xff]   ;;  %v2507_v44 = vld [vmem:[%s3177_s9 + $0x30] sm:$0xff]  }
 0x10d   : > { %v733_v47 = vadd.f32 %v732_v40, %v727_v42  ;;  %v2241_v48 = vpop.f32.mrb[3].mxu1  ;;  %v2505_v42 = vld [vmem:[%s3177_s9 + $0x20] sm:$0xff]   ;;  %v2508_v45 = vld [vmem:[%s3177_s9 + $0x38] sm:$0xff]  }
 0x10e   : > { %v2509_v46 = vld [vmem:[%s3177_s9] sm:$0xff]   ;;  %v2511_v48 = vld [vmem:[%s3177_s9 + $0x10] sm:$0xff]  }
 0x10f   : > { %2549 = vtanh.f32 %v733_v47  ;;  %v2510_v47 = vld [vmem:[%s3177_s9 + $0x8] sm:$0xff]  }
 0x119   : > { %v2837_v49 = vpop.eup %2549 }
 0x11a   : > { %v735_v51 = vpack.c.bf16 %v2837_v49, %v2837_v49 }
 0x11c   : > { %2259 = vmatmul.mubr.bf16.vlgmr.msra.gmra.mrb[4].mxu0 %v735_v51  ;;  %2279 = vmatmul.mubr.bf16.vlgmr.msra.gmra.mrb[4].mxu1 %v735_v51 }
 0x11d   : > { %2283 = vmatpush3.bf16.msra.mxu0 %v2485_v50  ;;  %2298 = vmatprep.mubr.msk.bf16.mxu0 %vm2581_vm0, %v2580_v2 }
 0x11e   : > { %2284 = vmatprep.subr.bf16.mxu0 %v2580_v2  ;;  %2318 = vmatprep.mubr.msk.bf16.mxu1 %vm2581_vm0, %v2580_v2 }
 0x11f   : > { %2303 = vmatpush3.bf16.msra.mxu1 %v2493_v13 }
 0x120   : > { %2304 = vmatprep.subr.bf16.mxu1 %v2580_v2 }
 0x121   : > { %2285 = vmatpush3.bf16.msra.mxu0 %v2486_v52 }
 0x122   : > { %2286 = vmatprep.subr.bf16.mxu0 %v2580_v2 }
 0x123   : > { %2305 = vmatpush3.bf16.msra.mxu1 %v2494_v14 }
 0x124   : > { %2306 = vmatprep.subr.bf16.mxu1 %v2580_v2 }
 0x125   : > { %2287 = vmatpush3.bf16.msra.mxu0 %v2487_v53 }
 0x126   : > { %2288 = vmatprep.subr.bf16.mxu0 %v2580_v2 }
 0x127   : > { %2307 = vmatpush3.bf16.msra.mxu1 %v2495_v15  ;;  %v2520_v15 = vld [vmem:[%s3177_s9 + $0x18] sm:$0xff]  }
 0x128   : > { %2308 = vmatprep.subr.bf16.mxu1 %v2580_v2 }
 0x129   : > { %2289 = vmatpush3.bf16.msra.mxu0 %v2488_v54 }
 0x12a   : > { %2290 = vmatprep.subr.bf16.mxu0 %v2580_v2 }
 0x12b   : > { %2309 = vmatpush3.bf16.msra.mxu1 %v2496_v16  ;;  %v2521_v16 = vld [vmem:[%s3177_s9 + $0x20] sm:$0xff]  }
 0x12c   : > { %2310 = vmatprep.subr.bf16.mxu1 %v2580_v2 }
 0x12d   : > { %2291 = vmatpush3.bf16.msra.mxu0 %v2489_v55 }
 0x12e   : > { %2292 = vmatprep.subr.bf16.mxu0 %v2580_v2 }
 0x12f   : > { %2311 = vmatpush3.bf16.msra.mxu1 %v2497_v17  ;;  %v2522_v17 = vld [vmem:[%s3177_s9 + $0x28] sm:$0xff]  }
 0x130   : > { %2312 = vmatprep.subr.bf16.mxu1 %v2580_v2 }
 0x131   : > { %2293 = vmatpush3.bf16.msra.mxu0 %v2490_v56 }
 0x132   : > { %2294 = vmatprep.subr.bf16.mxu0 %v2580_v2 }
 0x133   : > { %2313 = vmatpush3.bf16.msra.mxu1 %v2498_v18  ;;  %v2523_v18 = vld [vmem:[%s3177_s9 + $0x30] sm:$0xff]  }
 0x134   : > { %2314 = vmatprep.subr.bf16.mxu1 %v2580_v2 }
 0x135   : > { %2295 = vmatpush3.bf16.msra.mxu0 %v2491_v57 }
 0x136   : > { %2296 = vmatprep.subr.bf16.mxu0 %v2580_v2 }
 0x137   : > { %2315 = vmatpush3.bf16.msra.mxu1 %v2499_v19  ;;  %v2524_v19 = vld [vmem:[%s3177_s9 + $0x38] sm:$0xff]  }
 0x138   : > { %2316 = vmatprep.subr.bf16.mxu1 %v2580_v2 }
 0x139   : > { %2297 = vmatpush3.bf16.msra.mxu0 %v2492_v58 }
 0x13a   : > { %2322 = vmatprep.subr.bf16.mxu0 %v2580_v2 }
 0x13b   : > { %2317 = vmatpush3.bf16.msra.mxu1 %v2500_v20  ;;  %v2525_v20 = vld [vmem:[%s3177_s9] sm:$0xff]  }
 0x13c   : > { %2342 = vmatprep.subr.bf16.mxu1 %v2580_v2 }
 0x1ef   : > { %v835_v63 = vpop.f32.mrb[4].mxu0  ;;  %v972_v0 = vpop.f32.mrb[4].mxu1 }
 0x1f0   : > { %v2886_v1 = vadd.f32 %v835_v63, %v752_v61  ;;  %v973_v3 = vadd.f32 %v972_v0, %v889_v62  ;;  %v2260_v4 = vpop.f32.mrb[5].mxu0  ;;  %v2280_v5 = vpop.f32.mrb[5].mxu1  ;;  %v2513_v61 = vld [vmem:[%s3177_s9 + $0x20] sm:$0xff]   ;;  %v2514_v62 = vld [vmem:[%s3177_s9 + $0x28] sm:$0xff]   ;;  %v2515_v63 = vld [vmem:[%s3177_s9 + $0x30] sm:$0xff]  }
 0x1f1   : > { %v838_v6 = vpop.f32.mrb[6].mxu0  ;;  %v975_v7 = vpop.f32.mrb[6].mxu1  ;;  %v2516_v0 = vld [vmem:[%s3177_s9 + $0x38] sm:$0xff]   ;;  %v2518_v4 = vld [vmem:[%s3177_s9 + $0x8] sm:$0xff]   ;;  %v2519_v5 = vld [vmem:[%s3177_s9 + $0x10] sm:$0xff]  }
 0x1f2   : > { %v979_v8 = vpack.c.bf16 %v973_v3, %v973_v3  ;;  %v2261_v9 = vpop.f32.mrb[7].mxu0  ;;  %v2281_v10 = vpop.f32.mrb[7].mxu1  ;;  %v844_v11 = vsel %vm843_vm1, %v2886_v1, -1e+30  ;;  %v2517_v3 = vld [vmem:[%s3177_s9] sm:$0xff]  }
 0x1f3   : > { %v846_v12 = vsel %vm845_vm2, %v844_v11, -inf }
 0x1f4   : > { %847 = vmax.xlane.f32.xlu0 %v846_v12  ;;  %2299 = vmatmul.mubr.bf16.vlgmr.msra.gmra.mrb[8].mxu0 %v979_v8 }
 0x1f5   : > { %2338 = vmatprep.mubr.msk.bf16.mxu0 %vm2581_vm0, %v2580_v2  ;;  %2323 = vmatpush3.bf16.msra.mxu0 %v2501_v27 }
 0x1f6   : > { %2324 = vmatprep.subr.bf16.mxu0 %v2580_v2 }
 0x1f9   : > { %2325 = vmatpush3.bf16.msra.mxu0 %v2502_v28 }
 0x1fa   : > { %2326 = vmatprep.subr.bf16.mxu0 %v2580_v2 }
 0x1fd   : > { %2327 = vmatpush3.bf16.msra.mxu0 %v2503_v29 }
 0x1fe   : > { %2328 = vmatprep.subr.bf16.mxu0 %v2580_v2 }
 0x201   : > { %2329 = vmatpush3.bf16.msra.mxu0 %v2504_v39  ;;  %v2534_v39 = vld [vmem:[%s3178_s10] sm:$0xff]  }
 0x202   : > { %2330 = vmatprep.subr.bf16.mxu0 %v2580_v2 }
 0x205   : > { %2331 = vmatpush3.bf16.msra.mxu0 %v2505_v42 }
 0x206   : > { %2332 = vmatprep.subr.bf16.mxu0 %v2580_v2 }
 0x209   : > { %2333 = vmatpush3.bf16.msra.mxu0 %v2506_v43 }
 0x20a   : > { %2334 = vmatprep.subr.bf16.mxu0 %v2580_v2 }
 0x20d   : > { %2335 = vmatpush3.bf16.msra.mxu0 %v2507_v44 }
 0x20e   : > { %2336 = vmatprep.subr.bf16.mxu0 %v2580_v2 }
 0x211   : > { %2337 = vmatpush3.bf16.msra.mxu0 %v2508_v45 }
 0x212   : > { %2362 = vmatprep.subr.bf16.mxu0 %v2580_v2 }
 0x281   : > { %v848_v21 = vpop.xlane.xlu0 %847 }
 0x282   : > { %v849_v22 = vsub.f32 %v844_v11, %v848_v21  ;;  %v2526_v21 = vld [vmem:[%s3177_s9 + $0x8] sm:$0xff]  }
 0x284   : > { %v850_v23 = vmul.f32 1.442695, %v849_v22  ;;  %v2527_v22 = vld [vmem:[%s3177_s9 + $0x10] sm:$0xff]  }
 0x286   : > { %2551 = vpow2.f32 %v850_v23 }
 0x290   : > { %v2552_v24 = vpop.eup %2551 }
 0x291   : > { %v852_v25 = vsel %vm843_vm1, %v2552_v24, 0.0 }
 0x292   : > { %v853_v26 = vsel %vm845_vm2, %v852_v25, 0.0 }
 0x293   : > { %854 = vadd.xlane.f32.xlu1 %v853_v26 }
 0x2c7   : > { %v1078_v31 = vpop.f32.mrb[8].mxu0 }
 0x2c8   : > { %v1084_v32 = vadd.f32 %v1078_v31, %v2942_v30  ;;  %v2300_v33 = vpop.f32.mrb[9].mxu0 }
 0x2c9   : > { %v1081_v34 = vpop.f32.mrb[10].mxu0 }
 0x2ca   : > { %2553 = vtanh.f32 %v1084_v32  ;;  %v2301_v35 = vpop.f32.mrb[11].mxu0  ;;  %v2528_v34 = vld [vmem:[%s3177_s9 + $0x18] sm:$0xff]  }
 0x2cb   : > { %v2529_v35 = vld [vmem:[%s3177_s9 + $0x20] sm:$0xff]  }
 0x2d4   : > { %v2554_v36 = vpop.eup %2553 }
 0x2d5   : > { %1086 = vst [vmem:[#allocation3] sm:$0x1] %v2554_v36  ;;  %v1087_v37 = vpack.c.bf16 %v2554_v36, %v2554_v36  ;;  %v2530_v36 = vld [vmem:[%s3177_s9 + $0x28] sm:$0xff]  }
 0x2d7   : > { %2319 = vmatmul.mubr.bf16.vlgmr.msra.gmra.mrb[8].mxu1 %v1087_v37  ;;  %v2531_v37 = vld [vmem:[%s3177_s9 + $0x30] sm:$0xff]  }
 0x2d8   : > { %2358 = vmatprep.mubr.msk.bf16.mxu1 %vm2581_vm0, %v2580_v2  ;;  %2343 = vmatpush3.bf16.msra.mxu1 %v2509_v46 }
 0x2d9   : > { %2344 = vmatprep.subr.bf16.mxu1 %v2580_v2 }
 0x2dc   : > { %2345 = vmatpush3.bf16.msra.mxu1 %v2510_v47 }
 0x2dd   : > { %2346 = vmatprep.subr.bf16.mxu1 %v2580_v2 }
 0x2e0   : > { %2347 = vmatpush3.bf16.msra.mxu1 %v2511_v48 }
 0x2e1   : > { %2348 = vmatprep.subr.bf16.mxu1 %v2580_v2 }
 0x2e4   : > { %2349 = vmatpush3.bf16.msra.mxu1 %v2512_v59  ;;  %v2543_v59 = vld [vmem:[%s3180_s12 + $0x28] sm:$0xff]  }
 0x2e5   : > { %2350 = vmatprep.subr.bf16.mxu1 %v2580_v2 }
 0x2e8   : > { %2351 = vmatpush3.bf16.msra.mxu1 %v2513_v61  ;;  %v2544_v61 = vld [vmem:[%s3178_s10 + $0x28] sm:$0xff]  }
 0x2e9   : > { %2352 = vmatprep.subr.bf16.mxu1 %v2580_v2 }
 0x2ec   : > { %2353 = vmatpush3.bf16.msra.mxu1 %v2514_v62  ;;  %v2545_v62 = vld [vmem:[%s3180_s12 + $0x30] sm:$0xff]  }
 0x2ed   : > { %2354 = vmatprep.subr.bf16.mxu1 %v2580_v2 }
 0x2f0   : > { %2355 = vmatpush3.bf16.msra.mxu1 %v2515_v63  ;;  %v2546_v63 = vld [vmem:[%s3178_s10 + $0x30] sm:$0xff]  }
 0x2f1   : > { %2356 = vmatprep.subr.bf16.mxu1 %v2580_v2 }
 0x2f4   : > { %2357 = vmatpush3.bf16.msra.mxu1 %v2516_v0  ;;  %v2547_v0 = vld [vmem:[%s3180_s12 + $0x38] sm:$0xff]  }
 0x2f5   : > { %2382 = vmatprep.subr.bf16.mxu1 %v2580_v2 }
 0x320   : > { %v855_v38 = vpop.xlane.xlu1 %854 }
 0x321   : > { %2555 = vrcp.f32 %v855_v38  ;;  %v2532_v38 = vld [vmem:[%s3177_s9 + $0x38] sm:$0xff]  }
 0x32b   : > { %v2556_v40 = vpop.eup %2555 }
 0x32c   : > { %v857_v41 = vmul.f32 %v2556_v40, %v852_v25  ;;  %v2536_v40 = vld [vmem:[%s3178_s10 + $0x8] sm:$0xff]  }
 0x32e   : > { %858 = vst [vmem:[%s508_s30] sm:$0x1] %v857_v41 }
 0x3aa   : > { %v1186_v50 = vpop.f32.mrb[8].mxu1 }
 0x3ab   : > { %v1193_v51 = vrot.slane %v1186_v50, 7  ;;  %v2320_v52 = vpop.f32.mrb[9].mxu1  ;;  %v2533_v50 = vld [vmem:[%s3180_s12] sm:$0xff]  }
 0x3ac   : > { %v1189_v53 = vpop.f32.mrb[10].mxu1  ;;  %v2535_v52 = vld [vmem:[%s3180_s12 + $0x8] sm:$0xff]  }
 0x3ad   : > { %v1195_v54 = vadd.f32 %v1193_v51, %v2942_v30  ;;  %v2321_v55 = vpop.f32.mrb[11].mxu1  ;;  %v2537_v53 = vld [vmem:[%s3180_s12 + $0x10] sm:$0xff]  }
 0x3ae   : > { %v2539_v55 = vld [vmem:[%s3180_s12 + $0x18] sm:$0xff]  }
 0x3af   : > { %2557 = vtanh.f32 %v1195_v54  ;;  %v2538_v54 = vld [vmem:[%s3178_s10 + $0x10] sm:$0xff]  }
 0x3b9   : > { %v2558_v56 = vpop.eup %2557 }
 0x3ba   : > { %1197 = vst [vmem:[#allocation3] sm:$0x2] %v2558_v56  ;;  %v1198_v57 = vpack.c.bf16 %v2558_v56, %v2558_v56  ;;  %v2540_v56 = vld [vmem:[%s3178_s10 + $0x18] sm:$0xff]  }
 0x3bc   : > { %v1216_v58 = vshrl.u32 %v1198_v57, 16  ;;  %v2541_v57 = vld [vmem:[%s3180_s12 + $0x20] sm:$0xff]  }
 0x3be   : > { %2339 = vmatmul.mubr.bf16.vlgmr.msra.gmra.mrb[12].mxu0 %v1216_v58  ;;  %v2542_v58 = vld [vmem:[%s3178_s10 + $0x20] sm:$0xff]  }
 0x3bf   : > { %2378 = vmatprep.mubr.msk.bf16.mxu0 %vm2581_vm0, %v2580_v2  ;;  %2363 = vmatpush3.bf16.msra.mxu0 %v2517_v3  ;;  %v2548_v3 = vld [vmem:[%s3178_s10 + $0x38] sm:$0xff]  }
 0x3c0   : > { %2364 = vmatprep.subr.bf16.mxu0 %v2580_v2 }
 0x3c3   : > { %2365 = vmatpush3.bf16.msra.mxu0 %v2518_v4 }
 0x3c4   : > { %2366 = vmatprep.subr.bf16.mxu0 %v2580_v2 }
 0x3c7   : > { %2367 = vmatpush3.bf16.msra.mxu0 %v2519_v5 }
 0x3c8   : > { %2368 = vmatprep.subr.bf16.mxu0 %v2580_v2 }
 0x3cb   : > { %2369 = vmatpush3.bf16.msra.mxu0 %v2520_v15 }
 0x3cc   : > { %2370 = vmatprep.subr.bf16.mxu0 %v2580_v2 }
 0x3cf   : > { %2371 = vmatpush3.bf16.msra.mxu0 %v2521_v16 }
 0x3d0   : > { %2372 = vmatprep.subr.bf16.mxu0 %v2580_v2 }
 0x3d3   : > { %2373 = vmatpush3.bf16.msra.mxu0 %v2522_v17 }
 0x3d4   : > { %2374 = vmatprep.subr.bf16.mxu0 %v2580_v2 }
 0x3d7   : > { %2375 = vmatpush3.bf16.msra.mxu0 %v2523_v18 }
 0x3d8   : > { %2376 = vmatprep.subr.bf16.mxu0 %v2580_v2 }
 0x3db   : > { %2377 = vmatpush3.bf16.msra.mxu0 %v2524_v19  ;;  %v2075_v19 = vld [vmem:[%s3179_s11] ss:$0 sm:$0xff] }
 0x3dc   : > { %2402 = vmatprep.subr.bf16.mxu0 %v2580_v2 }
 0x491   : > { %v1301_v6 = vpop.f32.mrb[12].mxu0 }
 0x492   : > { %v1308_v7 = vrot.slane %v1301_v6, 6  ;;  %v2340_v8 = vpop.f32.mrb[13].mxu0 }
 0x493   : > { %v1304_v9 = vpop.f32.mrb[14].mxu0 }
 0x494   : > { %v1310_v10 = vadd.f32 %v1308_v7, %v2942_v30  ;;  %v2341_v11 = vpop.f32.mrb[15].mxu0 }
 0x496   : > { %2559 = vtanh.f32 %v1310_v10 }
 0x4a0   : > { %v2560_v12 = vpop.eup %2559 }
 0x4a1   : > { %1312 = vst [vmem:[#allocation3] sm:$0x4] %v2560_v12  ;;  %v1313_v13 = vpack.c.bf16 %v2560_v12, %v2560_v12 }
 0x4a3   : > { %v1331_v14 = vrot.slane %v1313_v13, 1 }
 0x4a5   : > { %2359 = vmatmul.mubr.bf16.vlgmr.msra.gmra.mrb[12].mxu1 %v1331_v14 }
 0x4a6   : > { %2398 = vmatprep.mubr.msk.bf16.mxu1 %vm2581_vm0, %v2580_v2  ;;  %2383 = vmatpush3.bf16.msra.mxu1 %v2525_v20 }
 0x4a7   : > { %2384 = vmatprep.subr.bf16.mxu1 %v2580_v2 }
 0x4aa   : > { %2385 = vmatpush3.bf16.msra.mxu1 %v2526_v21 }
 0x4ab   : > { %2386 = vmatprep.subr.bf16.mxu1 %v2580_v2 }
 0x4ae   : > { %2387 = vmatpush3.bf16.msra.mxu1 %v2527_v22 }
 0x4af   : > { %2388 = vmatprep.subr.bf16.mxu1 %v2580_v2 }
 0x4b2   : > { %2389 = vmatpush3.bf16.msra.mxu1 %v2528_v34  ;;  %v863_v34 = vsel %vm862_vm6, %v2886_v1, -1e+30 }
 0x4b3   : > { %2390 = vmatprep.subr.bf16.mxu1 %v2580_v2 }
 0x4b6   : > { %2391 = vmatpush3.bf16.msra.mxu1 %v2529_v35  ;;  %v867_v35 = vsel %vm845_vm2, %v863_v34, -inf }
 0x4b7   : > { %2392 = vmatprep.subr.bf16.mxu1 %v2580_v2 }
 0x4ba   : > { %2393 = vmatpush3.bf16.msra.mxu1 %v2530_v36 }
 0x4bb   : > { %2394 = vmatprep.subr.bf16.mxu1 %v2580_v2 }
 0x4be   : > { %2395 = vmatpush3.bf16.msra.mxu1 %v2531_v37  ;;  %v1800_v37 = vld [vmem:[%s3181_s13] sm:$0x1] }
 0x4bf   : > { %2396 = vmatprep.subr.bf16.mxu1 %v2580_v2 }
 0x4c2   : > { %2397 = vmatpush3.bf16.msra.mxu1 %v2532_v38 }
 0x4c3   : > { %2422 = vmatprep.subr.bf16.mxu1 %v2580_v2 }
 0x578   : > { %v1415_v23 = vpop.f32.mrb[12].mxu1 }
 0x579   : > { %v1422_v24 = vrot.slane %v1415_v23, 5  ;;  %v2360_v25 = vpop.f32.mrb[13].mxu1 }
 0x57a   : > { %v1418_v26 = vpop.f32.mrb[14].mxu1 }
 0x57b   : > { %v1424_v27 = vadd.f32 %v1422_v24, %v2942_v30  ;;  %v2361_v28 = vpop.f32.mrb[15].mxu1  ;;  %v861_v26 = vsel %vm860_vm5, %v2886_v1, -1e+30 }
 0x57d   : > { %2561 = vtanh.f32 %v1424_v27  ;;  %v864_v27 = vsel %vm845_vm2, %v861_v26, -inf }
 0x587   : > { %v2562_v29 = vpop.eup %2561 }
 0x588   : > { %1426 = vst [vmem:[#allocation3] sm:$0x8] %v2562_v29  ;;  %v1427_v31 = vpack.c.bf16 %v2562_v29, %v2562_v29 }
 0x58a   : > { %v1445_v32 = vshrl.u32 %v1427_v31, 16 }
 0x58c   : > { %v1447_v33 = vrot.slane %v1445_v32, 1 }
 0x58e   : > { %2379 = vmatmul.mubr.bf16.vlgmr.msra.gmra.mrb[16].mxu0 %v1447_v33 }
 0x58f   : > { %2418 = vmatprep.mubr.msk.bf16.mxu0 %vm2581_vm0, %v2580_v2  ;;  %2403 = vmatpush3.bf16.msra.mxu0 %v2534_v39 }
 0x590   : > { %2404 = vmatprep.subr.bf16.mxu0 %v2580_v2 }
 0x593   : > { %2405 = vmatpush3.bf16.msra.mxu0 %v2536_v40 }
 0x594   : > { %2406 = vmatprep.subr.bf16.mxu0 %v2580_v2 }
 0x597   : > { %2407 = vmatpush3.bf16.msra.mxu0 %v2538_v54 }
 0x598   : > { %2408 = vmatprep.subr.bf16.mxu0 %v2580_v2 }
 0x59b   : > { %2409 = vmatpush3.bf16.msra.mxu0 %v2540_v56 }
 0x59c   : > { %2410 = vmatprep.subr.bf16.mxu0 %v2580_v2 }
 0x59f   : > { %2411 = vmatpush3.bf16.msra.mxu0 %v2542_v58 }
 0x5a0   : > { %2412 = vmatprep.subr.bf16.mxu0 %v2580_v2 }
 0x5a3   : > { %2413 = vmatpush3.bf16.msra.mxu0 %v2544_v61 }
 0x5a4   : > { %2414 = vmatprep.subr.bf16.mxu0 %v2580_v2 }
 0x5a7   : > { %2415 = vmatpush3.bf16.msra.mxu0 %v2546_v63 }
 0x5a8   : > { %2416 = vmatprep.subr.bf16.mxu0 %v2580_v2 }
 0x5ab   : > { %2417 = vmatpush3.bf16.msra.mxu0 %v2548_v3 }
 0x661   : > { %v1531_v41 = vpop.f32.mrb[16].mxu0 }
 0x662   : > { %v1538_v42 = vrot.slane %v1531_v41, 4  ;;  %v2380_v43 = vpop.f32.mrb[17].mxu0 }
 0x663   : > { %v1534_v44 = vpop.f32.mrb[18].mxu0 }
 0x664   : > { %v1540_v45 = vadd.f32 %v1538_v42, %v2942_v30  ;;  %v2381_v46 = vpop.f32.mrb[19].mxu0 }
 0x666   : > { %2563 = vtanh.f32 %v1540_v45 }
 0x670   : > { %v2564_v47 = vpop.eup %2563 }
 0x671   : > { %1542 = vst [vmem:[#allocation3] sm:$0x10] %v2564_v47  ;;  %v1543_v48 = vpack.c.bf16 %v2564_v47, %v2564_v47 }
 0x673   : > { %v1561_v51 = vrot.slane %v1543_v48, 2 }
 0x675   : > { %2399 = vmatmul.mubr.bf16.vlgmr.msra.gmra.mrb[16].mxu1 %v1561_v51 }
 0x676   : > { %2423 = vmatpush3.bf16.msra.mxu1 %v2533_v50  ;;  %2438 = vmatprep.mubr.msk.bf16.mxu1 %vm2581_vm0, %v2580_v2 }
 0x677   : > { %2424 = vmatprep.subr.bf16.mxu1 %v2580_v2 }
 0x67a   : > { %2425 = vmatpush3.bf16.msra.mxu1 %v2535_v52 }
 0x67b   : > { %2426 = vmatprep.subr.bf16.mxu1 %v2580_v2 }
 0x67e   : > { %2427 = vmatpush3.bf16.msra.mxu1 %v2537_v53 }
 0x67f   : > { %2428 = vmatprep.subr.bf16.mxu1 %v2580_v2 }
 0x682   : > { %2429 = vmatpush3.bf16.msra.mxu1 %v2539_v55 }
 0x683   : > { %2430 = vmatprep.subr.bf16.mxu1 %v2580_v2 }
 0x686   : > { %2431 = vmatpush3.bf16.msra.mxu1 %v2541_v57 }
 0x687   : > { %2432 = vmatprep.subr.bf16.mxu1 %v2580_v2 }
 0x68a   : > { %2433 = vmatpush3.bf16.msra.mxu1 %v2543_v59 }
 0x68b   : > { %2434 = vmatprep.subr.bf16.mxu1 %v2580_v2 }
 0x68e   : > { %2435 = vmatpush3.bf16.msra.mxu1 %v2545_v62 }
 0x68f   : > { %2436 = vmatprep.subr.bf16.mxu1 %v2580_v2 }
 0x692   : > { %2437 = vmatpush3.bf16.msra.mxu1 %v2547_v0 }
 0x748   : > { %v1645_v4 = vpop.f32.mrb[16].mxu1 }
 0x749   : > { %v1652_v5 = vrot.slane %v1645_v4, 3  ;;  %v2400_v6 = vpop.f32.mrb[17].mxu1 }
 0x74a   : > { %v1648_v7 = vpop.f32.mrb[18].mxu1 }
 0x74b   : > { %v1654_v8 = vadd.f32 %v1652_v5, %v2942_v30  ;;  %v2401_v9 = vpop.f32.mrb[19].mxu1 }
 0x74d   : > { %2565 = vtanh.f32 %v1654_v8 }
 0x757   : > { %v2566_v10 = vpop.eup %2565 }
 0x758   : > { %1656 = vst [vmem:[#allocation3] sm:$0x20] %v2566_v10  ;;  %v1783_v11 = vpack.c.bf16 %v2566_v10, %v2566_v10 }
 0x75a   : > { %v1802_v12 = vshrl.u32 %v1783_v11, 16 }
 0x75c   : > { %v1804_v13 = vrot.slane %v1802_v12, 2 }
 0x75e   : > { %2439 = vmatmul.mubr.bf16.vlgmr.msra.gmra.mrb[20].mxu1 %v1804_v13 }
 0x75f   : > { %v1657_v14 = vld [vmem:[#allocation3] sm:$0xff] }
 0x760   : > { %v1658_v15 = vpack.c.bf16 %v1657_v14, %v1657_v14 }
 0x762   : > { %2419 = vmatmul.mubr.bf16.vlgmr.msra.gmra.mrb[20].mxu0 %v1658_v15 }
 0x831   : > { %v1888_v16 = vpop.f32.mrb[20].mxu1 }
 0x832   : > { %v2440_v17 = vpop.f32.mrb[21].mxu1  ;;  %v1889_v60 = vadd.f32 %v1888_v16, %v1800_v37 }
 0x833   : > { %v1891_v18 = vpop.f32.mrb[22].mxu1 }
 0x834   : > { %v2441_v30 = vpop.f32.mrb[23].mxu1 }
 0x835   : > { %v1764_v20 = vpop.f32.mrb[20].mxu0 }
 0x836   : > { %v1765_v21 = vadd.f32 %v2075_v19, %v1764_v20  ;;  %v2420_v22 = vpop.f32.mrb[21].mxu0 }
 0x837   : > { %v1767_v23 = vpop.f32.mrb[22].mxu0 }
 0x838   : > { %v2421_v24 = vpop.f32.mrb[23].mxu0  ;;  %v1771_v25 = vsel %vm1770_vm4, %v1765_v21, -1e+30 }
 0x839   : > { %1772 = vmax.xlane.f32.xlu0 %v1771_v25 }
 0x83d   : > { %865 = vmax.xlane.f32.xlu0 %v864_v27 }
 0x8c6   : > { %v1773_v28 = vpop.xlane.xlu0 %1772 }
 0x8c7   : > { %v1774_v29 = vsub.f32 %v1771_v25, %v1773_v28 }
 0x8c9   : > { %v1775_v31 = vmul.f32 1.442695, %v1774_v29 }
 0x8ca   : > { %v866_v38 = vpop.xlane.xlu0 %865 }
 0x8cb   : > { %2567 = vpow2.f32 %v1775_v31 }
 0x8d5   : > { %v2568_v32 = vpop.eup %2567 }
 0x8d6   : > { %v1777_v33 = vsel %vm1770_vm4, %v2568_v32, 0.0 }
 0x8d7   : > { %1778 = vadd.xlane.f32.xlu1 %v1777_v33 }
 0x8db   : > { %868 = vmax.xlane.f32.xlu1 %v867_v35 }
 0x964   : > { %v1779_v36 = vpop.xlane.xlu1 %1778 }
 0x965   : > { %2569 = vrcp.f32 %v1779_v36 }
 0x968   : > { %v869_v39 = vpop.xlane.xlu1 %868 }
 0x969   : > { %vm870_vm7 = vcmp.gt.f32.partialorder %v866_v38, %v869_v39 }
 0x96a   : > { %v2018_v40 = vsel %vm870_vm7, 1.0, %v2580_v2 }
 0x96b   : > { %v1895_v41 = vsub.f32 1.0, %v2018_v40  ;;  %v1894_v42 = vmul.f32 %v2018_v40, %v1889_v60 }
 0x96d   : > { %v1896_v1 = vmul.f32 %v2837_v49, %v1895_v41 }
 0x96f   : > { %v2570_v43 = vpop.eup %2569  ;;  %v1897_v44 = vadd.f32 %v1896_v1, %v1894_v42 }
 0x970   : > { %v1781_v45 = vmul.f32 %v2570_v43, %v1777_v33 }
 0x971   : > { %1898 = vst [vmem:[#allocation2] sm:$0x1] %v1897_v44 }
 0x972   : > { %1782 = vst [vmem:[%s2689_s18] sm:$0xff] %v1781_v45 }
 0x973 PF: > { %s3186_s30 = sld [smem:[#allocation4_spill]] }
 0x979   : > { %s26_s18 = sadd.s32 1, %s3186_s30  }
 0x97a   : > { %p23_p5 = scmp.ge.s32.totalorder %s26_s18, 8  }
 0x97c   :  { %25 = sbr.rel (!%p23_p5) target bundleno = 1 (0x1), region = 125 }

</bundles_post_ra>
